<compile_context>
chip_gen: v7x
topology: tpu7x:2x2x1
jax: 0.10.0
libtpu: 0.0.40
codegen_flags: <defaults>
</compile_context>

<pallas_src>
import jax
import jax.numpy as jnp
import numpy as np
from jax.experimental import pallas as pl

F32 = jnp.float32

_GCN_KEYS = ("w1a", "w1b", "b1", "w2", "b2", "w3x", "w3e", "b3", "w4", "b4")
_GRU_KEYS = ("w_ir", "w_iz", "w_in", "w_hr", "w_hz", "w_hn",
             "b_r", "b_z", "b_in", "b_hn")
_LANE = 128   # lane-dense padding width for the delta output


# ----------------------------- fused forward kernel ---------------------------
def _make_fused_kernel(n_gn):
    n_gcn_refs = 10 * n_gn

    def kernel(*refs):
        # inputs: x, hidden, 3 selectors, 10*n_gn GCN weights, 20 GRU weights,
        #         padded linear weight.  outputs: delta_pad, new_hidden.
        x_ref, hid_ref, sel_i_ref, sel_j_ref, sel_agg_ref = refs[:5]
        gcn_refs = refs[5:5 + n_gcn_refs]
        gru_refs = refs[5 + n_gcn_refs:5 + n_gcn_refs + 20]
        lin_ref = refs[5 + n_gcn_refs + 20]
        delta_ref = refs[5 + n_gcn_refs + 21]
        hidden_ref = refs[5 + n_gcn_refs + 22]

        x = x_ref[...]                      # (B*K, S_in)
        sel_i = sel_i_ref[...]              # (B*K*K, B*K) block-diag 0/1
        sel_j = sel_j_ref[...]              # (B*K*K, B*K)
        sel_agg = sel_agg_ref[...]          # (B*K,   B*K*K)

        # ---------------- stacked GCN layers (all of gn_cd, in order) ---------
        for g in range(n_gn):
            w1a, w1b, b1, w2, b2, w3x, w3e, b3, w4, b4 = [
                gcn_refs[10 * g + t][...] for t in range(10)]
            # node projections for the whole batch at once
            xi = jnp.dot(x, w1a, preferred_element_type=F32)        # (BK, H)
            xj = jnp.dot(x, w1b, preferred_element_type=F32)        # (BK, H)
            # pairwise edge features for every (b, i, j): rows = B*K*K
            e = jax.nn.relu(jnp.dot(sel_i, xi, preferred_element_type=F32)
                            + jnp.dot(sel_j, xj, preferred_element_type=F32)
                            + b1)                                   # (BKK, H)
            e = jax.nn.relu(jnp.dot(e, w2, preferred_element_type=F32) + b2)
            # aggregate over j (includes i==j self-pairs, as before)
            agg = jnp.dot(sel_agg, e, preferred_element_type=F32)   # (BK, H)
            # node MLP (W3 split into x- and agg- halves == concat then matmul)
            h = jax.nn.relu(jnp.dot(x, w3x, preferred_element_type=F32)
                            + jnp.dot(agg, w3e, preferred_element_type=F32)
                            + b3)                                   # (BK, H)
            x = jnp.dot(h, w4, preferred_element_type=F32) + b4     # (BK, E)

        # ---------------- 2-layer GRU, single timestep (batch_first) ----------
        def gru_step(xt, h_prev, p):
            w_ir, w_iz, w_in, w_hr, w_hz, w_hn, b_r, b_z, b_in, b_hn = p
            r = jax.nn.sigmoid(jnp.dot(xt, w_ir, preferred_element_type=F32)
                               + jnp.dot(h_prev, w_hr, preferred_element_type=F32)
                               + b_r)
            z = jax.nn.sigmoid(jnp.dot(xt, w_iz, preferred_element_type=F32)
                               + jnp.dot(h_prev, w_hz, preferred_element_type=F32)
                               + b_z)
            n = jnp.tanh(jnp.dot(xt, w_in, preferred_element_type=F32) + b_in
                         + r * (jnp.dot(h_prev, w_hn, preferred_element_type=F32)
                                + b_hn))
            return (1.0 - z) * n + z * h_prev

        p0 = tuple(gru_refs[t][...] for t in range(10))
        p1 = tuple(gru_refs[10 + t][...] for t in range(10))
        h0 = gru_step(x, hid_ref[0], p0)                            # (BK, E)
        h1 = gru_step(h0, hid_ref[1], p1)                           # (BK, E)
        hidden_ref[0] = h0.astype(hidden_ref.dtype)
        hidden_ref[1] = h1.astype(hidden_ref.dtype)

        # ---------------- final linear, lane-dense 128-wide padded output -----
        delta_ref[...] = jnp.dot(h1, lin_ref[...],
                                 preferred_element_type=F32).astype(delta_ref.dtype)

    return kernel


# ----------------------------- wrapper -----------------------------------------
def _build_selectors(B, K):
    """Constant block-diagonal 0/1 matrices for pairwise expansion/aggregation.

    Row m of the pairwise table corresponds to (b, i, j) with
      b = m // (K*K), i = (m // K) % K, j = m % K.
    """
    BK, BKK = B * K, B * K * K
    m = np.arange(BKK)
    node_i = m // K                          # == b*K + i
    node_j = (m // (K * K)) * K + m % K      # == b*K + j
    sel_i = np.zeros((BKK, BK), np.float32)
    sel_j = np.zeros((BKK, BK), np.float32)
    sel_agg = np.zeros((BK, BKK), np.float32)
    sel_i[m, node_i] = 1.0
    sel_j[m, node_j] = 1.0
    sel_agg[node_i, m] = 1.0                 # agg[b*K+i] = sum_j e[(b,i,j)]
    return jnp.asarray(sel_i), jnp.asarray(sel_j), jnp.asarray(sel_agg)


def dynamic_module_forward(params, inpt, hidden_cd=None):
    B, K, S = inpt.shape
    n_gn = len(params["gns"])
    E = params["emb_size"]
    state_size = params["state_size"]
    BK = B * K

    # wrapper-side layout plumbing (free): collapse batch onto the row axis
    x2 = inpt.reshape(BK, S).astype(F32)
    if hidden_cd is None:
        hidden_cd = jnp.zeros((2, BK, E), F32)

    sel_i, sel_j, sel_agg = _build_selectors(B, K)

    operands = [x2, hidden_cd, sel_i, sel_j, sel_agg]
    for gp in params["gns"]:
        operands += [gp[k] for k in _GCN_KEYS]
    for lp in params["gru"]:
        operands += [lp[k] for k in _GRU_KEYS]
    operands.append(params["lin_wt_pad"])

    delta_pad, new_hidden = pl.pallas_call(
        _make_fused_kernel(n_gn),
        # no grid / no BlockSpecs: single invocation, every operand is a full
        # array resident in VMEM (total footprint << VMEM on v5e/v6e/v7x).
        out_shape=(jax.ShapeDtypeStruct((BK, _LANE), F32),
                   jax.ShapeDtypeStruct((2, BK, E), F32)),
    )(*operands)

    delta = delta_pad[:, :state_size].reshape(B, K, state_size)
    return delta, new_hidden


# ----------------------------- deterministic params ----------------------------
def _split_gru_gates(wih, whh, bih, bhh, E):
    """PyTorch packed GRU params ([r|z|n] rows) -> per-gate transposed weights."""
    wih_t, whh_t = wih.T, whh.T              # (E_in, 3E), (E, 3E)
    return dict(
        w_ir=wih_t[:, :E], w_iz=wih_t[:, E:2 * E], w_in=wih_t[:, 2 * E:],
        w_hr=whh_t[:, :E], w_hz=whh_t[:, E:2 * E], w_hn=whh_t[:, 2 * E:],
        b_r=(bih[:E] + bhh[:E]).reshape(1, E),
        b_z=(bih[E:2 * E] + bhh[E:2 * E]).reshape(1, E),
        b_in=bih[2 * E:].reshape(1, E),
        b_hn=bhh[2 * E:].reshape(1, E),
    )


def init_params(key, state_size, cf_size, hidden_size, emb_size, n_gn):
    def dense(k, shape):
        return (0.1 * jax.random.normal(k, shape)).astype(F32)

    keys = iter(jax.random.split(key, 128))
    gns = []
    in_size = state_size + cf_size
    for _ in range(n_gn):
        gns.append(dict(
            w1a=dense(next(keys), (in_size, hidden_size)),
            w1b=dense(next(keys), (in_size, hidden_size)),
            b1=dense(next(keys), (1, hidden_size)),
            w2=dense(next(keys), (hidden_size, hidden_size)),
            b2=dense(next(keys), (1, hidden_size)),
            w3x=dense(next(keys), (in_size, hidden_size)),
            w3e=dense(next(keys), (hidden_size, hidden_size)),
            b3=dense(next(keys), (1, hidden_size)),
            w4=dense(next(keys), (hidden_size, emb_size)),
            b4=dense(next(keys), (1, emb_size)),
        ))
        in_size = emb_size

    gru = []
    E = emb_size
    for _ in range(2):  # nn.GRU(emb, emb, num_layers=2): input == hidden == E
        wih = dense(next(keys), (3 * E, E))   # PyTorch convention, rows [r|z|n]
        whh = dense(next(keys), (3 * E, E))
        bih = dense(next(keys), (3 * E,))
        bhh = dense(next(keys), (3 * E,))
        gru.append(_split_gru_gates(wih, whh, bih, bhh, E))

    # Linear(emb, state, bias=False).weight.T, zero-padded to a lane-dense slab
    lin_wt = dense(next(keys), (emb_size, state_size))
    lin_wt_pad = jnp.zeros((emb_size, _LANE), F32).at[:, :state_size].set(lin_wt)

    return dict(gns=gns, gru=gru, lin_wt=lin_wt, lin_wt_pad=lin_wt_pad,
                state_size=state_size, emb_size=emb_size)


if __name__ == "__main__":
    state_size, cf_size = 4, 4
    hidden_size, emb_size, n_gn = 32, 32, 2
    B, K = 2, 4

    key = jax.random.PRNGKey(0)
    pkey, xkey = jax.random.split(key)
    params = init_params(pkey, state_size, cf_size, hidden_size, emb_size, n_gn)

    inpt = jax.random.normal(xkey, (B, K, state_size + cf_size), dtype=F32)

    # first step: hidden_cd is None (zero initial state, like PyTorch GRU)
    delta, hidden = dynamic_module_forward(params, inpt, hidden_cd=None)
    # second step: re-feed the returned hidden state (2, B*K, E)
    delta2, hidden2 = dynamic_module_forward(params, inpt, hidden_cd=hidden)
    jax.block_until_ready((delta, hidden, delta2, hidden2))

    assert delta.shape == (B, K, state_size)
    assert hidden.shape == (2, B * K, emb_size)
    assert delta2.shape == (B, K, state_size)
    assert hidden2.shape == (2, B * K, emb_size)
    print("KERNEL_OK")
</pallas_src>

<mosaic_0001>
module attributes {stable_mosaic.version = 11 : i64} {
  func.func @kernel(%arg0: memref<8x8xf32, #tpu.memory_space<vmem>>, %arg1: memref<2x8x32xf32, #tpu.memory_space<vmem>>, %arg2: memref<32x8xf32, #tpu.memory_space<vmem>>, %arg3: memref<32x8xf32, #tpu.memory_space<vmem>>, %arg4: memref<8x32xf32, #tpu.memory_space<vmem>>, %arg5: memref<8x32xf32, #tpu.memory_space<vmem>>, %arg6: memref<8x32xf32, #tpu.memory_space<vmem>>, %arg7: memref<1x32xf32, #tpu.memory_space<vmem>>, %arg8: memref<32x32xf32, #tpu.memory_space<vmem>>, %arg9: memref<1x32xf32, #tpu.memory_space<vmem>>, %arg10: memref<8x32xf32, #tpu.memory_space<vmem>>, %arg11: memref<32x32xf32, #tpu.memory_space<vmem>>, %arg12: memref<1x32xf32, #tpu.memory_space<vmem>>, %arg13: memref<32x32xf32, #tpu.memory_space<vmem>>, %arg14: memref<1x32xf32, #tpu.memory_space<vmem>>, %arg15: memref<32x32xf32, #tpu.memory_space<vmem>>, %arg16: memref<32x32xf32, #tpu.memory_space<vmem>>, %arg17: memref<1x32xf32, #tpu.memory_space<vmem>>, %arg18: memref<32x32xf32, #tpu.memory_space<vmem>>, %arg19: memref<1x32xf32, #tpu.memory_space<vmem>>, %arg20: memref<32x32xf32, #tpu.memory_space<vmem>>, %arg21: memref<32x32xf32, #tpu.memory_space<vmem>>, %arg22: memref<1x32xf32, #tpu.memory_space<vmem>>, %arg23: memref<32x32xf32, #tpu.memory_space<vmem>>, %arg24: memref<1x32xf32, #tpu.memory_space<vmem>>, %arg25: memref<32x32xf32, #tpu.memory_space<vmem>>, %arg26: memref<32x32xf32, #tpu.memory_space<vmem>>, %arg27: memref<32x32xf32, #tpu.memory_space<vmem>>, %arg28: memref<32x32xf32, #tpu.memory_space<vmem>>, %arg29: memref<32x32xf32, #tpu.memory_space<vmem>>, %arg30: memref<32x32xf32, #tpu.memory_space<vmem>>, %arg31: memref<1x32xf32, #tpu.memory_space<vmem>>, %arg32: memref<1x32xf32, #tpu.memory_space<vmem>>, %arg33: memref<1x32xf32, #tpu.memory_space<vmem>>, %arg34: memref<1x32xf32, #tpu.memory_space<vmem>>, %arg35: memref<32x32xf32, #tpu.memory_space<vmem>>, %arg36: memref<32x32xf32, #tpu.memory_space<vmem>>, %arg37: memref<32x32xf32, #tpu.memory_space<vmem>>, %arg38: memref<32x32xf32, #tpu.memory_space<vmem>>, %arg39: memref<32x32xf32, #tpu.memory_space<vmem>>, %arg40: memref<32x32xf32, #tpu.memory_space<vmem>>, %arg41: memref<1x32xf32, #tpu.memory_space<vmem>>, %arg42: memref<1x32xf32, #tpu.memory_space<vmem>>, %arg43: memref<1x32xf32, #tpu.memory_space<vmem>>, %arg44: memref<1x32xf32, #tpu.memory_space<vmem>>, %arg45: memref<32x128xf32, #tpu.memory_space<vmem>>, %arg46: memref<8x128xf32, #tpu.memory_space<vmem>>, %arg47: memref<2x8x32xf32, #tpu.memory_space<vmem>>) attributes {dimension_semantics = [], scalar_prefetch = 0 : i64, scratch_operands = 0 : i64, tpu.core_type = #tpu.core_type<tc>} {
    %c0 = arith.constant 0 : index
    %c0_0 = arith.constant 0 : index
    %0 = vector.load %arg0[%c0, %c0_0] : memref<8x8xf32, #tpu.memory_space<vmem>>, vector<8x8xf32>
    %c0_1 = arith.constant 0 : index
    %c0_2 = arith.constant 0 : index
    %1 = vector.load %arg2[%c0_1, %c0_2] : memref<32x8xf32, #tpu.memory_space<vmem>>, vector<32x8xf32>
    %c0_3 = arith.constant 0 : index
    %c0_4 = arith.constant 0 : index
    %2 = vector.load %arg3[%c0_3, %c0_4] : memref<32x8xf32, #tpu.memory_space<vmem>>, vector<32x8xf32>
    %c0_5 = arith.constant 0 : index
    %c0_6 = arith.constant 0 : index
    %3 = vector.load %arg4[%c0_5, %c0_6] : memref<8x32xf32, #tpu.memory_space<vmem>>, vector<8x32xf32>
    %c0_7 = arith.constant 0 : index
    %c0_8 = arith.constant 0 : index
    %4 = vector.load %arg5[%c0_7, %c0_8] : memref<8x32xf32, #tpu.memory_space<vmem>>, vector<8x32xf32>
    %c0_9 = arith.constant 0 : index
    %c0_10 = arith.constant 0 : index
    %5 = vector.load %arg6[%c0_9, %c0_10] : memref<8x32xf32, #tpu.memory_space<vmem>>, vector<8x32xf32>
    %c0_11 = arith.constant 0 : index
    %c0_12 = arith.constant 0 : index
    %6 = vector.load %arg7[%c0_11, %c0_12] : memref<1x32xf32, #tpu.memory_space<vmem>>, vector<1x32xf32>
    %c0_13 = arith.constant 0 : index
    %c0_14 = arith.constant 0 : index
    %7 = vector.load %arg8[%c0_13, %c0_14] : memref<32x32xf32, #tpu.memory_space<vmem>>, vector<32x32xf32>
    %c0_15 = arith.constant 0 : index
    %c0_16 = arith.constant 0 : index
    %8 = vector.load %arg9[%c0_15, %c0_16] : memref<1x32xf32, #tpu.memory_space<vmem>>, vector<1x32xf32>
    %c0_17 = arith.constant 0 : index
    %c0_18 = arith.constant 0 : index
    %9 = vector.load %arg10[%c0_17, %c0_18] : memref<8x32xf32, #tpu.memory_space<vmem>>, vector<8x32xf32>
    %c0_19 = arith.constant 0 : index
    %c0_20 = arith.constant 0 : index
    %10 = vector.load %arg11[%c0_19, %c0_20] : memref<32x32xf32, #tpu.memory_space<vmem>>, vector<32x32xf32>
    %c0_21 = arith.constant 0 : index
    %c0_22 = arith.constant 0 : index
    %11 = vector.load %arg12[%c0_21, %c0_22] : memref<1x32xf32, #tpu.memory_space<vmem>>, vector<1x32xf32>
    %c0_23 = arith.constant 0 : index
    %c0_24 = arith.constant 0 : index
    %12 = vector.load %arg13[%c0_23, %c0_24] : memref<32x32xf32, #tpu.memory_space<vmem>>, vector<32x32xf32>
    %c0_25 = arith.constant 0 : index
    %c0_26 = arith.constant 0 : index
    %13 = vector.load %arg14[%c0_25, %c0_26] : memref<1x32xf32, #tpu.memory_space<vmem>>, vector<1x32xf32>
    %cst = arith.constant dense<0.000000e+00> : vector<8x32xf32>
    %14 = tpu.matmul %0, %4, %cst {dimension_numbers = #tpu.dot_dimension_numbers<[1], [0], [0], [1], [0, 0, 1, 1], [], []>} : vector<8x8xf32>, vector<8x32xf32>, vector<8x32xf32> -> vector<8x32xf32>
    %cst_27 = arith.constant dense<0.000000e+00> : vector<8x32xf32>
    %15 = tpu.matmul %0, %5, %cst_27 {dimension_numbers = #tpu.dot_dimension_numbers<[1], [0], [0], [1], [0, 0, 1, 1], [], []>} : vector<8x8xf32>, vector<8x32xf32>, vector<8x32xf32> -> vector<8x32xf32>
    %cst_28 = arith.constant dense<0.000000e+00> : vector<32x32xf32>
    %16 = tpu.matmul %1, %14, %cst_28 {dimension_numbers = #tpu.dot_dimension_numbers<[1], [0], [0], [1], [0, 0, 1, 1], [], []>} : vector<32x8xf32>, vector<8x32xf32>, vector<32x32xf32> -> vector<32x32xf32>
    %cst_29 = arith.constant dense<0.000000e+00> : vector<32x32xf32>
    %17 = tpu.matmul %2, %15, %cst_29 {dimension_numbers = #tpu.dot_dimension_numbers<[1], [0], [0], [1], [0, 0, 1, 1], [], []>} : vector<32x8xf32>, vector<8x32xf32>, vector<32x32xf32> -> vector<32x32xf32>
    %18 = arith.addf %16, %17 : vector<32x32xf32>
    %19 = vector.broadcast %6 : vector<1x32xf32> to vector<32x32xf32>
    %20 = arith.addf %18, %19 : vector<32x32xf32>
    %cst_30 = arith.constant 0.000000e+00 : f32
    %21 = vector.broadcast %cst_30 : f32 to vector<32x32xf32>
    %22 = arith.maximumf %20, %21 : vector<32x32xf32>
    %cst_31 = arith.constant dense<0.000000e+00> : vector<32x32xf32>
    %23 = tpu.matmul %22, %7, %cst_31 {dimension_numbers = #tpu.dot_dimension_numbers<[1], [0], [0], [1], [0, 0, 1, 1], [], []>} : vector<32x32xf32>, vector<32x32xf32>, vector<32x32xf32> -> vector<32x32xf32>
    %24 = vector.broadcast %8 : vector<1x32xf32> to vector<32x32xf32>
    %25 = arith.addf %23, %24 : vector<32x32xf32>
    %cst_32 = arith.constant 0.000000e+00 : f32
    %26 = vector.broadcast %cst_32 : f32 to vector<32x32xf32>
    %27 = arith.maximumf %25, %26 : vector<32x32xf32>
    %cst_33 = arith.constant dense<0.000000e+00> : vector<8x32xf32>
    %28 = tpu.matmul %3, %27, %cst_33 {dimension_numbers = #tpu.dot_dimension_numbers<[1], [0], [0], [1], [0, 0, 1, 1], [], []>} : vector<8x32xf32>, vector<32x32xf32>, vector<8x32xf32> -> vector<8x32xf32>
    %cst_34 = arith.constant dense<0.000000e+00> : vector<8x32xf32>
    %29 = tpu.matmul %0, %9, %cst_34 {dimension_numbers = #tpu.dot_dimension_numbers<[1], [0], [0], [1], [0, 0, 1, 1], [], []>} : vector<8x8xf32>, vector<8x32xf32>, vector<8x32xf32> -> vector<8x32xf32>
    %cst_35 = arith.constant dense<0.000000e+00> : vector<8x32xf32>
    %30 = tpu.matmul %28, %10, %cst_35 {dimension_numbers = #tpu.dot_dimension_numbers<[1], [0], [0], [1], [0, 0, 1, 1], [], []>} : vector<8x32xf32>, vector<32x32xf32>, vector<8x32xf32> -> vector<8x32xf32>
    %31 = arith.addf %29, %30 : vector<8x32xf32>
    %32 = vector.broadcast %11 : vector<1x32xf32> to vector<8x32xf32>
    %33 = arith.addf %31, %32 : vector<8x32xf32>
    %cst_36 = arith.constant 0.000000e+00 : f32
    %34 = vector.broadcast %cst_36 : f32 to vector<8x32xf32>
    %35 = arith.maximumf %33, %34 : vector<8x32xf32>
    %cst_37 = arith.constant dense<0.000000e+00> : vector<8x32xf32>
    %36 = tpu.matmul %35, %12, %cst_37 {dimension_numbers = #tpu.dot_dimension_numbers<[1], [0], [0], [1], [0, 0, 1, 1], [], []>} : vector<8x32xf32>, vector<32x32xf32>, vector<8x32xf32> -> vector<8x32xf32>
    %37 = vector.broadcast %13 : vector<1x32xf32> to vector<8x32xf32>
    %38 = arith.addf %36, %37 : vector<8x32xf32>
    %c0_38 = arith.constant 0 : index
    %c0_39 = arith.constant 0 : index
    %39 = vector.load %arg15[%c0_38, %c0_39] : memref<32x32xf32, #tpu.memory_space<vmem>>, vector<32x32xf32>
    %c0_40 = arith.constant 0 : index
    %c0_41 = arith.constant 0 : index
    %40 = vector.load %arg16[%c0_40, %c0_41] : memref<32x32xf32, #tpu.memory_space<vmem>>, vector<32x32xf32>
    %c0_42 = arith.constant 0 : index
    %c0_43 = arith.constant 0 : index
    %41 = vector.load %arg17[%c0_42, %c0_43] : memref<1x32xf32, #tpu.memory_space<vmem>>, vector<1x32xf32>
    %c0_44 = arith.constant 0 : index
    %c0_45 = arith.constant 0 : index
    %42 = vector.load %arg18[%c0_44, %c0_45] : memref<32x32xf32, #tpu.memory_space<vmem>>, vector<32x32xf32>
    %c0_46 = arith.constant 0 : index
    %c0_47 = arith.constant 0 : index
    %43 = vector.load %arg19[%c0_46, %c0_47] : memref<1x32xf32, #tpu.memory_space<vmem>>, vector<1x32xf32>
    %c0_48 = arith.constant 0 : index
    %c0_49 = arith.constant 0 : index
    %44 = vector.load %arg20[%c0_48, %c0_49] : memref<32x32xf32, #tpu.memory_space<vmem>>, vector<32x32xf32>
    %c0_50 = arith.constant 0 : index
    %c0_51 = arith.constant 0 : index
    %45 = vector.load %arg21[%c0_50, %c0_51] : memref<32x32xf32, #tpu.memory_space<vmem>>, vector<32x32xf32>
    %c0_52 = arith.constant 0 : index
    %c0_53 = arith.constant 0 : index
    %46 = vector.load %arg22[%c0_52, %c0_53] : memref<1x32xf32, #tpu.memory_space<vmem>>, vector<1x32xf32>
    %c0_54 = arith.constant 0 : index
    %c0_55 = arith.constant 0 : index
    %47 = vector.load %arg23[%c0_54, %c0_55] : memref<32x32xf32, #tpu.memory_space<vmem>>, vector<32x32xf32>
    %c0_56 = arith.constant 0 : index
    %c0_57 = arith.constant 0 : index
    %48 = vector.load %arg24[%c0_56, %c0_57] : memref<1x32xf32, #tpu.memory_space<vmem>>, vector<1x32xf32>
    %cst_58 = arith.constant dense<0.000000e+00> : vector<8x32xf32>
    %49 = tpu.matmul %38, %39, %cst_58 {dimension_numbers = #tpu.dot_dimension_numbers<[1], [0], [0], [1], [0, 0, 1, 1], [], []>} : vector<8x32xf32>, vector<32x32xf32>, vector<8x32xf32> -> vector<8x32xf32>
    %cst_59 = arith.constant dense<0.000000e+00> : vector<8x32xf32>
    %50 = tpu.matmul %38, %40, %cst_59 {dimension_numbers = #tpu.dot_dimension_numbers<[1], [0], [0], [1], [0, 0, 1, 1], [], []>} : vector<8x32xf32>, vector<32x32xf32>, vector<8x32xf32> -> vector<8x32xf32>
    %cst_60 = arith.constant dense<0.000000e+00> : vector<32x32xf32>
    %51 = tpu.matmul %1, %49, %cst_60 {dimension_numbers = #tpu.dot_dimension_numbers<[1], [0], [0], [1], [0, 0, 1, 1], [], []>} : vector<32x8xf32>, vector<8x32xf32>, vector<32x32xf32> -> vector<32x32xf32>
    %cst_61 = arith.constant dense<0.000000e+00> : vector<32x32xf32>
    %52 = tpu.matmul %2, %50, %cst_61 {dimension_numbers = #tpu.dot_dimension_numbers<[1], [0], [0], [1], [0, 0, 1, 1], [], []>} : vector<32x8xf32>, vector<8x32xf32>, vector<32x32xf32> -> vector<32x32xf32>
    %53 = arith.addf %51, %52 : vector<32x32xf32>
    %54 = vector.broadcast %41 : vector<1x32xf32> to vector<32x32xf32>
    %55 = arith.addf %53, %54 : vector<32x32xf32>
    %cst_62 = arith.constant 0.000000e+00 : f32
    %56 = vector.broadcast %cst_62 : f32 to vector<32x32xf32>
    %57 = arith.maximumf %55, %56 : vector<32x32xf32>
    %cst_63 = arith.constant dense<0.000000e+00> : vector<32x32xf32>
    %58 = tpu.matmul %57, %42, %cst_63 {dimension_numbers = #tpu.dot_dimension_numbers<[1], [0], [0], [1], [0, 0, 1, 1], [], []>} : vector<32x32xf32>, vector<32x32xf32>, vector<32x32xf32> -> vector<32x32xf32>
    %59 = vector.broadcast %43 : vector<1x32xf32> to vector<32x32xf32>
    %60 = arith.addf %58, %59 : vector<32x32xf32>
    %cst_64 = arith.constant 0.000000e+00 : f32
    %61 = vector.broadcast %cst_64 : f32 to vector<32x32xf32>
    %62 = arith.maximumf %60, %61 : vector<32x32xf32>
    %cst_65 = arith.constant dense<0.000000e+00> : vector<8x32xf32>
    %63 = tpu.matmul %3, %62, %cst_65 {dimension_numbers = #tpu.dot_dimension_numbers<[1], [0], [0], [1], [0, 0, 1, 1], [], []>} : vector<8x32xf32>, vector<32x32xf32>, vector<8x32xf32> -> vector<8x32xf32>
    %cst_66 = arith.constant dense<0.000000e+00> : vector<8x32xf32>
    %64 = tpu.matmul %38, %44, %cst_66 {dimension_numbers = #tpu.dot_dimension_numbers<[1], [0], [0], [1], [0, 0, 1, 1], [], []>} : vector<8x32xf32>, vector<32x32xf32>, vector<8x32xf32> -> vector<8x32xf32>
    %cst_67 = arith.constant dense<0.000000e+00> : vector<8x32xf32>
    %65 = tpu.matmul %63, %45, %cst_67 {dimension_numbers = #tpu.dot_dimension_numbers<[1], [0], [0], [1], [0, 0, 1, 1], [], []>} : vector<8x32xf32>, vector<32x32xf32>, vector<8x32xf32> -> vector<8x32xf32>
    %66 = arith.addf %64, %65 : vector<8x32xf32>
    %67 = vector.broadcast %46 : vector<1x32xf32> to vector<8x32xf32>
    %68 = arith.addf %66, %67 : vector<8x32xf32>
    %cst_68 = arith.constant 0.000000e+00 : f32
    %69 = vector.broadcast %cst_68 : f32 to vector<8x32xf32>
    %70 = arith.maximumf %68, %69 : vector<8x32xf32>
    %cst_69 = arith.constant dense<0.000000e+00> : vector<8x32xf32>
    %71 = tpu.matmul %70, %47, %cst_69 {dimension_numbers = #tpu.dot_dimension_numbers<[1], [0], [0], [1], [0, 0, 1, 1], [], []>} : vector<8x32xf32>, vector<32x32xf32>, vector<8x32xf32> -> vector<8x32xf32>
    %72 = vector.broadcast %48 : vector<1x32xf32> to vector<8x32xf32>
    %73 = arith.addf %71, %72 : vector<8x32xf32>
    %c0_70 = arith.constant 0 : index
    %c0_71 = arith.constant 0 : index
    %74 = vector.load %arg25[%c0_70, %c0_71] : memref<32x32xf32, #tpu.memory_space<vmem>>, vector<32x32xf32>
    %c0_72 = arith.constant 0 : index
    %c0_73 = arith.constant 0 : index
    %75 = vector.load %arg26[%c0_72, %c0_73] : memref<32x32xf32, #tpu.memory_space<vmem>>, vector<32x32xf32>
    %c0_74 = arith.constant 0 : index
    %c0_75 = arith.constant 0 : index
    %76 = vector.load %arg27[%c0_74, %c0_75] : memref<32x32xf32, #tpu.memory_space<vmem>>, vector<32x32xf32>
    %c0_76 = arith.constant 0 : index
    %c0_77 = arith.constant 0 : index
    %77 = vector.load %arg28[%c0_76, %c0_77] : memref<32x32xf32, #tpu.memory_space<vmem>>, vector<32x32xf32>
    %c0_78 = arith.constant 0 : index
    %c0_79 = arith.constant 0 : index
    %78 = vector.load %arg29[%c0_78, %c0_79] : memref<32x32xf32, #tpu.memory_space<vmem>>, vector<32x32xf32>
    %c0_80 = arith.constant 0 : index
    %c0_81 = arith.constant 0 : index
    %79 = vector.load %arg30[%c0_80, %c0_81] : memref<32x32xf32, #tpu.memory_space<vmem>>, vector<32x32xf32>
    %c0_82 = arith.constant 0 : index
    %c0_83 = arith.constant 0 : index
    %80 = vector.load %arg31[%c0_82, %c0_83] : memref<1x32xf32, #tpu.memory_space<vmem>>, vector<1x32xf32>
    %c0_84 = arith.constant 0 : index
    %c0_85 = arith.constant 0 : index
    %81 = vector.load %arg32[%c0_84, %c0_85] : memref<1x32xf32, #tpu.memory_space<vmem>>, vector<1x32xf32>
    %c0_86 = arith.constant 0 : index
    %c0_87 = arith.constant 0 : index
    %82 = vector.load %arg33[%c0_86, %c0_87] : memref<1x32xf32, #tpu.memory_space<vmem>>, vector<1x32xf32>
    %c0_88 = arith.constant 0 : index
    %c0_89 = arith.constant 0 : index
    %83 = vector.load %arg34[%c0_88, %c0_89] : memref<1x32xf32, #tpu.memory_space<vmem>>, vector<1x32xf32>
    %c0_90 = arith.constant 0 : index
    %c0_91 = arith.constant 0 : index
    %84 = vector.load %arg35[%c0_90, %c0_91] : memref<32x32xf32, #tpu.memory_space<vmem>>, vector<32x32xf32>
    %c0_92 = arith.constant 0 : index
    %c0_93 = arith.constant 0 : index
    %85 = vector.load %arg36[%c0_92, %c0_93] : memref<32x32xf32, #tpu.memory_space<vmem>>, vector<32x32xf32>
    %c0_94 = arith.constant 0 : index
    %c0_95 = arith.constant 0 : index
    %86 = vector.load %arg37[%c0_94, %c0_95] : memref<32x32xf32, #tpu.memory_space<vmem>>, vector<32x32xf32>
    %c0_96 = arith.constant 0 : index
    %c0_97 = arith.constant 0 : index
    %87 = vector.load %arg38[%c0_96, %c0_97] : memref<32x32xf32, #tpu.memory_space<vmem>>, vector<32x32xf32>
    %c0_98 = arith.constant 0 : index
    %c0_99 = arith.constant 0 : index
    %88 = vector.load %arg39[%c0_98, %c0_99] : memref<32x32xf32, #tpu.memory_space<vmem>>, vector<32x32xf32>
    %c0_100 = arith.constant 0 : index
    %c0_101 = arith.constant 0 : index
    %89 = vector.load %arg40[%c0_100, %c0_101] : memref<32x32xf32, #tpu.memory_space<vmem>>, vector<32x32xf32>
    %c0_102 = arith.constant 0 : index
    %c0_103 = arith.constant 0 : index
    %90 = vector.load %arg41[%c0_102, %c0_103] : memref<1x32xf32, #tpu.memory_space<vmem>>, vector<1x32xf32>
    %c0_104 = arith.constant 0 : index
    %c0_105 = arith.constant 0 : index
    %91 = vector.load %arg42[%c0_104, %c0_105] : memref<1x32xf32, #tpu.memory_space<vmem>>, vector<1x32xf32>
    %c0_106 = arith.constant 0 : index
    %c0_107 = arith.constant 0 : index
    %92 = vector.load %arg43[%c0_106, %c0_107] : memref<1x32xf32, #tpu.memory_space<vmem>>, vector<1x32xf32>
    %c0_108 = arith.constant 0 : index
    %c0_109 = arith.constant 0 : index
    %93 = vector.load %arg44[%c0_108, %c0_109] : memref<1x32xf32, #tpu.memory_space<vmem>>, vector<1x32xf32>
    %c0_110 = arith.constant 0 : index
    %c0_111 = arith.constant 0 : index
    %c0_112 = arith.constant 0 : index
    %94 = vector.load %arg1[%c0_110, %c0_111, %c0_112] : memref<2x8x32xf32, #tpu.memory_space<vmem>>, vector<1x8x32xf32>
    %95 = vector.shape_cast %94 : vector<1x8x32xf32> to vector<8x32xf32>
    %cst_113 = arith.constant dense<0.000000e+00> : vector<8x32xf32>
    %96 = tpu.matmul %73, %74, %cst_113 {dimension_numbers = #tpu.dot_dimension_numbers<[1], [0], [0], [1], [0, 0, 1, 1], [], []>} : vector<8x32xf32>, vector<32x32xf32>, vector<8x32xf32> -> vector<8x32xf32>
    %cst_114 = arith.constant dense<0.000000e+00> : vector<8x32xf32>
    %97 = tpu.matmul %95, %77, %cst_114 {dimension_numbers = #tpu.dot_dimension_numbers<[1], [0], [0], [1], [0, 0, 1, 1], [], []>} : vector<8x32xf32>, vector<32x32xf32>, vector<8x32xf32> -> vector<8x32xf32>
    %98 = arith.addf %96, %97 : vector<8x32xf32>
    %99 = vector.broadcast %80 : vector<1x32xf32> to vector<8x32xf32>
    %100 = arith.addf %98, %99 : vector<8x32xf32>
    %101 = arith.negf %100 : vector<8x32xf32>
    %102 = math.exp %101 : vector<8x32xf32>
    %cst_115 = arith.constant 1.000000e+00 : f32
    %103 = vector.broadcast %cst_115 : f32 to vector<8x32xf32>
    %104 = arith.addf %103, %102 : vector<8x32xf32>
    %105 = arith.divf %103, %104 : vector<8x32xf32>
    %cst_116 = arith.constant dense<0.000000e+00> : vector<8x32xf32>
    %106 = tpu.matmul %73, %75, %cst_116 {dimension_numbers = #tpu.dot_dimension_numbers<[1], [0], [0], [1], [0, 0, 1, 1], [], []>} : vector<8x32xf32>, vector<32x32xf32>, vector<8x32xf32> -> vector<8x32xf32>
    %cst_117 = arith.constant dense<0.000000e+00> : vector<8x32xf32>
    %107 = tpu.matmul %95, %78, %cst_117 {dimension_numbers = #tpu.dot_dimension_numbers<[1], [0], [0], [1], [0, 0, 1, 1], [], []>} : vector<8x32xf32>, vector<32x32xf32>, vector<8x32xf32> -> vector<8x32xf32>
    %108 = arith.addf %106, %107 : vector<8x32xf32>
    %109 = vector.broadcast %81 : vector<1x32xf32> to vector<8x32xf32>
    %110 = arith.addf %108, %109 : vector<8x32xf32>
    %111 = arith.negf %110 : vector<8x32xf32>
    %112 = math.exp %111 : vector<8x32xf32>
    %cst_118 = arith.constant 1.000000e+00 : f32
    %113 = vector.broadcast %cst_118 : f32 to vector<8x32xf32>
    %114 = arith.addf %113, %112 : vector<8x32xf32>
    %115 = arith.divf %113, %114 : vector<8x32xf32>
    %cst_119 = arith.constant dense<0.000000e+00> : vector<8x32xf32>
    %116 = tpu.matmul %73, %76, %cst_119 {dimension_numbers = #tpu.dot_dimension_numbers<[1], [0], [0], [1], [0, 0, 1, 1], [], []>} : vector<8x32xf32>, vector<32x32xf32>, vector<8x32xf32> -> vector<8x32xf32>
    %117 = vector.broadcast %82 : vector<1x32xf32> to vector<8x32xf32>
    %118 = arith.addf %116, %117 : vector<8x32xf32>
    %cst_120 = arith.constant dense<0.000000e+00> : vector<8x32xf32>
    %119 = tpu.matmul %95, %79, %cst_120 {dimension_numbers = #tpu.dot_dimension_numbers<[1], [0], [0], [1], [0, 0, 1, 1], [], []>} : vector<8x32xf32>, vector<32x32xf32>, vector<8x32xf32> -> vector<8x32xf32>
    %120 = vector.broadcast %83 : vector<1x32xf32> to vector<8x32xf32>
    %121 = arith.addf %119, %120 : vector<8x32xf32>
    %122 = arith.mulf %105, %121 : vector<8x32xf32>
    %123 = arith.addf %118, %122 : vector<8x32xf32>
    %124 = math.tanh %123 : vector<8x32xf32>
    %cst_121 = arith.constant 1.000000e+00 : f32
    %125 = vector.broadcast %cst_121 : f32 to vector<8x32xf32>
    %126 = arith.subf %125, %115 : vector<8x32xf32>
    %127 = arith.mulf %126, %124 : vector<8x32xf32>
    %128 = arith.mulf %115, %95 : vector<8x32xf32>
    %129 = arith.addf %127, %128 : vector<8x32xf32>
    %c1 = arith.constant 1 : index
    %c0_122 = arith.constant 0 : index
    %c0_123 = arith.constant 0 : index
    %130 = vector.load %arg1[%c1, %c0_122, %c0_123] : memref<2x8x32xf32, #tpu.memory_space<vmem>>, vector<1x8x32xf32>
    %131 = vector.shape_cast %130 : vector<1x8x32xf32> to vector<8x32xf32>
    %cst_124 = arith.constant dense<0.000000e+00> : vector<8x32xf32>
    %132 = tpu.matmul %129, %84, %cst_124 {dimension_numbers = #tpu.dot_dimension_numbers<[1], [0], [0], [1], [0, 0, 1, 1], [], []>} : vector<8x32xf32>, vector<32x32xf32>, vector<8x32xf32> -> vector<8x32xf32>
    %cst_125 = arith.constant dense<0.000000e+00> : vector<8x32xf32>
    %133 = tpu.matmul %131, %87, %cst_125 {dimension_numbers = #tpu.dot_dimension_numbers<[1], [0], [0], [1], [0, 0, 1, 1], [], []>} : vector<8x32xf32>, vector<32x32xf32>, vector<8x32xf32> -> vector<8x32xf32>
    %134 = arith.addf %132, %133 : vector<8x32xf32>
    %135 = vector.broadcast %90 : vector<1x32xf32> to vector<8x32xf32>
    %136 = arith.addf %134, %135 : vector<8x32xf32>
    %137 = arith.negf %136 : vector<8x32xf32>
    %138 = math.exp %137 : vector<8x32xf32>
    %cst_126 = arith.constant 1.000000e+00 : f32
    %139 = vector.broadcast %cst_126 : f32 to vector<8x32xf32>
    %140 = arith.addf %139, %138 : vector<8x32xf32>
    %141 = arith.divf %139, %140 : vector<8x32xf32>
    %cst_127 = arith.constant dense<0.000000e+00> : vector<8x32xf32>
    %142 = tpu.matmul %129, %85, %cst_127 {dimension_numbers = #tpu.dot_dimension_numbers<[1], [0], [0], [1], [0, 0, 1, 1], [], []>} : vector<8x32xf32>, vector<32x32xf32>, vector<8x32xf32> -> vector<8x32xf32>
    %cst_128 = arith.constant dense<0.000000e+00> : vector<8x32xf32>
    %143 = tpu.matmul %131, %88, %cst_128 {dimension_numbers = #tpu.dot_dimension_numbers<[1], [0], [0], [1], [0, 0, 1, 1], [], []>} : vector<8x32xf32>, vector<32x32xf32>, vector<8x32xf32> -> vector<8x32xf32>
    %144 = arith.addf %142, %143 : vector<8x32xf32>
    %145 = vector.broadcast %91 : vector<1x32xf32> to vector<8x32xf32>
    %146 = arith.addf %144, %145 : vector<8x32xf32>
    %147 = arith.negf %146 : vector<8x32xf32>
    %148 = math.exp %147 : vector<8x32xf32>
    %cst_129 = arith.constant 1.000000e+00 : f32
    %149 = vector.broadcast %cst_129 : f32 to vector<8x32xf32>
    %150 = arith.addf %149, %148 : vector<8x32xf32>
    %151 = arith.divf %149, %150 : vector<8x32xf32>
    %cst_130 = arith.constant dense<0.000000e+00> : vector<8x32xf32>
    %152 = tpu.matmul %129, %86, %cst_130 {dimension_numbers = #tpu.dot_dimension_numbers<[1], [0], [0], [1], [0, 0, 1, 1], [], []>} : vector<8x32xf32>, vector<32x32xf32>, vector<8x32xf32> -> vector<8x32xf32>
    %153 = vector.broadcast %92 : vector<1x32xf32> to vector<8x32xf32>
    %154 = arith.addf %152, %153 : vector<8x32xf32>
    %cst_131 = arith.constant dense<0.000000e+00> : vector<8x32xf32>
    %155 = tpu.matmul %131, %89, %cst_131 {dimension_numbers = #tpu.dot_dimension_numbers<[1], [0], [0], [1], [0, 0, 1, 1], [], []>} : vector<8x32xf32>, vector<32x32xf32>, vector<8x32xf32> -> vector<8x32xf32>
    %156 = vector.broadcast %93 : vector<1x32xf32> to vector<8x32xf32>
    %157 = arith.addf %155, %156 : vector<8x32xf32>
    %158 = arith.mulf %141, %157 : vector<8x32xf32>
    %159 = arith.addf %154, %158 : vector<8x32xf32>
    %160 = math.tanh %159 : vector<8x32xf32>
    %cst_132 = arith.constant 1.000000e+00 : f32
    %161 = vector.broadcast %cst_132 : f32 to vector<8x32xf32>
    %162 = arith.subf %161, %151 : vector<8x32xf32>
    %163 = arith.mulf %162, %160 : vector<8x32xf32>
    %164 = arith.mulf %151, %131 : vector<8x32xf32>
    %165 = arith.addf %163, %164 : vector<8x32xf32>
    %c0_133 = arith.constant 0 : index
    %c0_134 = arith.constant 0 : index
    %c0_135 = arith.constant 0 : index
    %166 = vector.load %arg47[%c0_133, %c0_134, %c0_135] : memref<2x8x32xf32, #tpu.memory_space<vmem>>, vector<1x8x32xf32>
    %167 = vector.shape_cast %166 : vector<1x8x32xf32> to vector<8x32xf32>
    %168 = vector.shape_cast %129 : vector<8x32xf32> to vector<1x8x32xf32>
    tpu.vector_store %arg47[%c0_133, %c0_134, %c0_135], %168 {strides = array<i32>} : memref<2x8x32xf32, #tpu.memory_space<vmem>>, vector<1x8x32xf32>,
    %c1_136 = arith.constant 1 : index
    %c0_137 = arith.constant 0 : index
    %c0_138 = arith.constant 0 : index
    %169 = vector.load %arg47[%c1_136, %c0_137, %c0_138] : memref<2x8x32xf32, #tpu.memory_space<vmem>>, vector<1x8x32xf32>
    %170 = vector.shape_cast %169 : vector<1x8x32xf32> to vector<8x32xf32>
    %171 = vector.shape_cast %165 : vector<8x32xf32> to vector<1x8x32xf32>
    tpu.vector_store %arg47[%c1_136, %c0_137, %c0_138], %171 {strides = array<i32>} : memref<2x8x32xf32, #tpu.memory_space<vmem>>, vector<1x8x32xf32>,
    %c0_139 = arith.constant 0 : index
    %c0_140 = arith.constant 0 : index
    %172 = vector.load %arg45[%c0_139, %c0_140] : memref<32x128xf32, #tpu.memory_space<vmem>>, vector<32x128xf32>
    %cst_141 = arith.constant dense<0.000000e+00> : vector<8x128xf32>
    %173 = tpu.matmul %165, %172, %cst_141 {dimension_numbers = #tpu.dot_dimension_numbers<[1], [0], [0], [1], [0, 0, 1, 1], [], []>} : vector<8x32xf32>, vector<32x128xf32>, vector<8x128xf32> -> vector<8x128xf32>
    %c0_142 = arith.constant 0 : index
    %c0_143 = arith.constant 0 : index
    %174 = vector.load %arg46[%c0_142, %c0_143] : memref<8x128xf32, #tpu.memory_space<vmem>>, vector<8x128xf32>
    tpu.vector_store %arg46[%c0_142, %c0_143], %173 {strides = array<i32>} : memref<8x128xf32, #tpu.memory_space<vmem>>, vector<8x128xf32>,
    return
  }
}

</mosaic_0001>

<bundles_post_ra>
// kernel: tpu_custom_call.1
= control target key start
LH: loop header
LB: loop body
LE: loop exit
PB: predicated region body
PF: predicated region fallthrough
CT: control target
= control target key end

     0   :  { %s4840_s6 = smov 1   ;;  %s4841_s10 = smov 2   ;;  %s5603_s0 = inlined_call_operand.smem [shape: u32[48], index: -1, kind: input, shape index: {}] }
   0x1   :  { %s4932_s5 = sld [smem:[%s5603_s0]]   ;;  %s4842_s14 = smov 3  }
   0x2   :  { %s4937_s9 = sld [smem:[%s5603_s0 + %s4840_s6]]   ;;  %s4843_s18 = smov 4  }
   0x3   :  { %s4942_s13 = sld [smem:[%s5603_s0 + %s4841_s10]]   ;;  %s4844_s22 = smov 5  }
   0x4   :  { %s4947_s17 = sld [smem:[%s5603_s0 + %s4842_s14]]   ;;  %s4845_s26 = smov 6  }
   0x5   :  { %s4952_s21 = sld [smem:[%s5603_s0 + %s4843_s18]]   ;;  %s4846_s30 = smov 7  }
   0x6   :  { %s4957_s25 = sld [smem:[%s5603_s0 + %s4844_s22]]   ;;  %s4847_s4 = smov 8  }
   0x7   :  { %5628 = sst [smem:[#allocation70_spill]] %s4932_s5  ;;  %s4848_s10 = smov 9  }
   0x8   :  { %s4962_s29 = sld [smem:[%s5603_s0 + %s4845_s26]]   ;;  %s4849_s15 = smov 10  }
   0x9   :  { %5629 = sst [smem:[#allocation71_spill]] %s4942_s13  ;;  %s4850_s20 = smov 11  }
   0xa   :  { %5630 = sst [smem:[#allocation72_spill]] %s4947_s17  ;;  %s4851_s26 = smov 12  }
   0xb   :  { %5631 = sst [smem:[#allocation73_spill]] %s4952_s21  ;;  %s4852_s1 = smov 13  }
   0xc   :  { %s4967_s3 = sld [smem:[%s5603_s0 + %s4846_s30]]   ;;  %s4853_s7 = smov 14  }
   0xd   :  { %s4972_s8 = sld [smem:[%s5603_s0 + %s4847_s4]]   ;;  %s4855_s22 = smov 16  }
   0xe   :  { %5632 = sst [smem:[#allocation74_spill]] %s4962_s29  ;;  %s4856_s28 = smov 17  }
   0xf   :  { %s4977_s14 = sld [smem:[%s5603_s0 + %s4848_s10]]  }
  0x10   :  { %s4982_s19 = sld [smem:[%s5603_s0 + %s4849_s15]]   ;;  %s4854_s15 = smov 15  }
  0x11   :  { %s4987_s24 = sld [smem:[%s5603_s0 + %s4850_s20]]  }
  0x12   :  { %5633 = sst [smem:[#allocation75_spill]] %s4967_s3 }
  0x13   :  { %5634 = sst [smem:[#allocation76_spill]] %s4972_s8 }
  0x14   :  { %s4992_s30 = sld [smem:[%s5603_s0 + %s4851_s26]]  }
  0x15   :  { %s4997_s6 = sld [smem:[%s5603_s0 + %s4852_s1]]  }
  0x16   :  { %5635 = sst [smem:[#allocation77_spill]] %s4982_s19 }
  0x17   :  { %5636 = sst [smem:[#allocation78_spill]] %s4987_s24 }
  0x18   :  { %s5002_s12 = sld [smem:[%s5603_s0 + %s4853_s7]]   ;;  %s4857_s7 = smov 18  }
  0x19   :  { %s5007_s20 = sld [smem:[%s5603_s0 + %s4854_s15]]   ;;  %s4858_s15 = smov 19  }
  0x1a   :  { %s5012_s27 = sld [smem:[%s5603_s0 + %s4855_s22]]   ;;  %s4859_s22 = smov 20  }
  0x1b   :  { %5637 = sst [smem:[#allocation79_spill]] %s4997_s6 }
  0x1c   :  { %s5017_s4 = sld [smem:[%s5603_s0 + %s4856_s28]]   ;;  %s4860_s28 = smov 21  }
  0x1d   :  { %s5022_s6 = sld [smem:[%s5603_s0 + %s4857_s7]]   ;;  %s4861_s7 = smov 22  }
  0x1e   :  { %5638 = sst [smem:[#allocation80_spill]] %s5002_s12 }
  0x1f   :  { %5639 = sst [smem:[#allocation81_spill]] %s5007_s20 }
  0x20   :  { %s5027_s20 = sld [smem:[%s5603_s0 + %s4858_s15]]   ;;  %s4862_s15 = smov 23  }
  0x21   :  { %s5032_s24 = sld [smem:[%s5603_s0 + %s4859_s22]]   ;;  %s4863_s22 = smov 24  }
  0x22   :  { %5640 = sst [smem:[#allocation82_spill]] %s5017_s4 }
  0x23   :  { %s5037_s3 = sld [smem:[%s5603_s0 + %s4860_s28]]   ;;  %s4864_s28 = smov 25  }
  0x24   :  { %s5042_s13 = sld [smem:[%s5603_s0 + %s4861_s7]]   ;;  %s4865_s7 = smov 26  }
  0x25   :  { %s5047_s8 = sld [smem:[%s5603_s0 + %s4862_s15]]   ;;  %s4866_s15 = smov 27  }
  0x26   :  { %5641 = sst [smem:[#allocation83_spill]] %s5027_s20 }
  0x27   :  { %s5052_s17 = sld [smem:[%s5603_s0 + %s4863_s22]]   ;;  %s4867_s22 = smov 28  }
  0x28   :  { %s5062_s20 = sld [smem:[%s5603_s0 + %s4865_s7]]   ;;  %s4869_s7 = smov 30  }
  0x29   :  { %5642 = sst [smem:[#allocation84_spill]] %s5037_s3 }
  0x2a   :  { %s5057_s3 = sld [smem:[%s5603_s0 + %s4864_s28]]   ;;  %s4868_s28 = smov 29  }
  0x2b   :  { %5643 = sst [smem:[#allocation85_spill]] %s5047_s8 }
  0x2c   :  { %s5067_s8 = sld [smem:[%s5603_s0 + %s4866_s15]]   ;;  %s4870_s15 = smov 31  }
  0x2d   :  { %5644 = sst [smem:[#allocation86_spill]] %s5052_s17 }
  0x2e   :  { %5645 = sst [smem:[#allocation87_spill]] %s5062_s20 }
  0x2f   :  { %s5072_s17 = sld [smem:[%s5603_s0 + %s4867_s22]]   ;;  %s4871_s22 = smov 32  }
  0x30   :  { %s5077_s4 = sld [smem:[%s5603_s0 + %s4868_s28]]   ;;  %s4872_s28 = smov 33  }
  0x31   :  { %s5082_s20 = sld [smem:[%s5603_s0 + %s4869_s7]]   ;;  %s4873_s7 = smov 34  }
  0x32   :  { %s5087_s12 = sld [smem:[%s5603_s0 + %s4870_s15]]   ;;  %s4874_s15 = smov 35  }
  0x33   :  { %s5097_s19 = sld [smem:[%s5603_s0 + %s4872_s28]]   ;;  %s4876_s28 = smov 37  }
  0x35   :  { %5646 = sst [smem:[#allocation88_spill]] %s5072_s17 }
  0x36   :  { %s5092_s17 = sld [smem:[%s5603_s0 + %s4871_s22]]   ;;  %s4875_s22 = smov 36  }
  0x37   :  { %5647 = sst [smem:[#allocation89_spill]] %s5082_s20 }
  0x38   :  { %5648 = sst [smem:[#allocation90_spill]] %s5087_s12 }
  0x39   :  { %5650 = sst [smem:[#allocation92_spill]] %s5097_s19 }
  0x3a   :  { %s5102_s20 = sld [smem:[%s5603_s0 + %s4873_s7]]   ;;  %s4877_s7 = smov 38  }
  0x3b   :  { %s5107_s12 = sld [smem:[%s5603_s0 + %s4874_s15]]   ;;  %s4878_s15 = smov 39  }
  0x3c   :  { %5649 = sst [smem:[#allocation91_spill]] %s5092_s17 }
  0x3d   :  { %s5112_s17 = sld [smem:[%s5603_s0 + %s4875_s22]]   ;;  %s4879_s22 = smov 40  }
  0x3e   :  { %s5117_s19 = sld [smem:[%s5603_s0 + %s4876_s28]]   ;;  %s4880_s28 = smov 41  }
  0x3f   :  { %s5122_s29 = sld [smem:[%s5603_s0 + %s4877_s7]]   ;;  %s4881_s7 = smov 42  }
  0x40   :  { %s5132_s21 = sld [smem:[%s5603_s0 + %s4879_s22]]   ;;  %s4883_s22 = smov 44  }
  0x41   :  { %5651 = sst [smem:[#allocation93_spill]] %s5107_s12 }
  0x42   :  { %s5127_s12 = sld [smem:[%s5603_s0 + %s4878_s15]]   ;;  %s4882_s15 = smov 43  }
  0x43   :  { %s5142_s5 = sld [smem:[%s5603_s0 + %s4881_s7]]   ;;  %s4885_s7 = smov 46  }
  0x44   :  { %5652 = sst [smem:[#allocation94_spill]] %s5117_s19 }
  0x45   :  { %s5137_s19 = sld [smem:[%s5603_s0 + %s4880_s28]]   ;;  %s4884_s28 = smov 45  }
  0x46   :  { %5654 = sst [smem:[#allocation96_spill]] %s5132_s21 }
  0x47   :  { %s5152_s21 = sld [smem:[%s5603_s0 + %s4883_s22]]  }
  0x48   :  { %5653 = sst [smem:[#allocation95_spill]] %s5127_s12 }
  0x49   :  { %5656 = sst [smem:[#allocation98_spill]] %s5142_s5 }
  0x4a   :  { %s5147_s12 = sld [smem:[%s5603_s0 + %s4882_s15]]   ;;  %s4886_s15 = smov 47  }
  0x4b   :  { %5655 = sst [smem:[#allocation97_spill]] %s5137_s19 }
  0x4c   :  { %s5157_s19 = sld [smem:[%s5603_s0 + %s4884_s28]]  }
  0x4d   :  { %s5162_s5 = sld [smem:[%s5603_s0 + %s4885_s7]]  }
  0x50   :  { %5657 = sst [smem:[#allocation99_spill]] %s5147_s12 }
  0x51   :  { %s5167_s12 = sld [smem:[%s5603_s0 + %s4886_s15]]  }
  0x52   :  { %101 = vsyncpa [#allocation3], 0 }
  0x53   :  { %102 = vsyncpa [#allocation6], 0 }
  0x54   :  { %103 = vsyncpa [#allocation9], 0 }
  0x55   :  { %104 = vsyncpa [#allocation12], 0 }
  0x56   :  { %105 = vsyncpa [#allocation15], 0 }
  0x57   :  { %106 = vsyncpa [#allocation18], 0 }
  0x58   :  { %107 = vsyncpa [#allocation21], 0 }
  0x59   :  { %108 = vsyncpa [#allocation24], 0 }
  0x5a   :  { %109 = vsyncpa [#allocation27], 0 }
  0x5b   :  { %110 = vsyncpa [#allocation30], 0 }
  0x5c   :  { %111 = vsyncpa [#allocation33], 0 }
  0x5d   :  { %112 = vsyncpa [#allocation36], 0 }
  0x5e   :  { %113 = vsyncpa [#allocation39], 0 }
  0x5f   :  { %114 = vsyncpa [#allocation42], 0 }
  0x60   :  { %115 = vsyncpa [#allocation45], 0 }
  0x61   :  { %116 = vsyncpa [#allocation48], 0 }
  0x62   :  { %117 = vsyncpa [#allocation4], 0 }
  0x63   :  { %118 = vsyncpa [#allocation51], 0  ;;  %s4887_s0 = smov [#allocation5]   ;;  %s4100_s23 = scalar_lea.hbm %s4937_s9, 256 }
  0x64   :  { %s134_s22 = sshll.u32 %s4887_s0, 4  ;;  %p4101_p0 = scmp.ne.s32.totalorder %s4937_s9, %s4100_s23  ;;  %s135_s22 = int_to_ptr.vmem [resolvable:$true] %s134_s22 }
  0x65   :  { %p4104_p1 = scmp.lt.u32.totalorder %s4100_s23, %s4937_s9 }
  0x67   :  { %p4106_p2 = pnand %p4104_p1, %p4101_p0 }
  0x69   :  { %4109 = shalt.err (!%p4106_p2)
}
  0x6a   :  { %s4110_s26 = scalar_lea.vmem %s135_s22, 256  ;;  %p4115_p4 = scmp.lt.s32.totalorder %s135_s22, %s135_s22 }
  0x6b   :  { %p4111_p3 = scmp.ne.s32.totalorder %s135_s22, %s4110_s26  ;;  %p4116_p5 = scmp.lt.s32.totalorder %s4110_s26, %s4110_s26 }
  0x6d   :  { %p4117_p6 = por %p4116_p5, %p4115_p4 }
  0x6f   :  { %p4118_p7 = pnand %p4117_p6, %p4111_p3 }
  0x71   :  { %4121 = shalt.err (!%p4118_p7)
}
  0x72   :  { %s4888_s28 = smov 128   ;;  %s4889_s1 = smov 8  }
  0x73   :  { %140 = dma.hbm_to_vmem [thread:$0]  %s4937_s9, 256, %s135_s22, [#allocation6], %s4888_s28, %s4888_s28, %s4889_s1  }
  0x74   :  { %s4890_s2 = smov [#allocation8]   ;;  %s4891_s10 = smov [#allocation11]  }
  0x75   :  { %s161_s7 = sshll.u32 %s4890_s2, 4  ;;  %s185_s11 = sshll.u32 %s4891_s10, 4  ;;  %s162_s7 = int_to_ptr.vmem [resolvable:$true] %s161_s7  ;;  %s186_s11 = int_to_ptr.vmem [resolvable:$true] %s185_s11 }
  0x76   :  { %s4122_s15 = scalar_lea.hbm %s4957_s25, 128 }
  0x77   :  { %p4123_p8 = scmp.ne.s32.totalorder %s4957_s25, %s4122_s15  ;;  %p4126_p9 = scmp.lt.u32.totalorder %s4122_s15, %s4957_s25 }
  0x79   :  { %p4128_p10 = pnand %p4126_p9, %p4123_p8 }
  0x7b   :  { %4131 = shalt.err (!%p4128_p10)
}
  0x7c   :  { %s4132_s16 = scalar_lea.vmem %s162_s7, 128  ;;  %p4137_p12 = scmp.lt.s32.totalorder %s162_s7, %s162_s7 }
  0x7d   :  { %p4133_p11 = scmp.ne.s32.totalorder %s162_s7, %s4132_s16  ;;  %p4138_p13 = scmp.lt.s32.totalorder %s4132_s16, %s4132_s16 }
  0x7f   :  { %p4139_p0 = por %p4138_p13, %p4137_p12 }
  0x81   :  { %p4140_p1 = pnand %p4139_p0, %p4133_p11 }
  0x83   :  { %4143 = shalt.err (!%p4140_p1)
}
  0x84   :  { %164 = dma.hbm_to_vmem [thread:$0]  %s4957_s25, 128, %s162_s7, [#allocation9]  }
  0x85   :  { %s4144_s9 = scalar_lea.hbm %s4977_s14, 16 }
  0x86   :  { %p4145_p2 = scmp.ne.s32.totalorder %s4977_s14, %s4144_s9  ;;  %p4148_p3 = scmp.lt.u32.totalorder %s4144_s9, %s4977_s14 }
  0x88   :  { %p4150_p4 = pnand %p4148_p3, %p4145_p2 }
  0x8a   :  { %4153 = shalt.err (!%p4150_p4)
}
  0x8b   :  { %s4154_s18 = scalar_lea.vmem %s186_s11, 16  ;;  %s4158_s0 = scalar_lea.vmem %s186_s11, 32 }
  0x8c   :  { %p4155_p5 = scmp.ne.s32.totalorder %s186_s11, %s4154_s18  ;;  %p4159_p6 = scmp.lt.s32.totalorder %s186_s11, %s186_s11 }
  0x8d   :  { %p4160_p7 = scmp.lt.s32.totalorder %s4158_s0, %s4154_s18 }
  0x8f   :  { %p4161_p8 = por %p4160_p7, %p4159_p6 }
  0x91   :  { %p4162_p9 = pnand %p4161_p8, %p4155_p5 }
  0x93   :  { %4165 = shalt.err (!%p4162_p9)
}
  0x94   :  { %188 = dma.hbm_to_vmem [thread:$0]  %s4977_s14, 16, %s186_s11, [#allocation12]  }
  0x95   :  { %s4892_s25 = smov [#allocation14]   ;;  %s4893_s23 = smov [#allocation17]  }
  0x96   :  { %s207_s22 = sshll.u32 %s4892_s25, 4  ;;  %s230_s26 = sshll.u32 %s4893_s23, 4  ;;  %s208_s22 = int_to_ptr.vmem [resolvable:$true] %s207_s22  ;;  %s231_s26 = int_to_ptr.vmem [resolvable:$true] %s230_s26 }
  0x97   :  { %s4166_s2 = scalar_lea.hbm %s4992_s30, 16 }
  0x98   :  { %p4167_p10 = scmp.ne.s32.totalorder %s4992_s30, %s4166_s2  ;;  %p4170_p11 = scmp.lt.u32.totalorder %s4166_s2, %s4992_s30 }
  0x9a   :  { %p4172_p12 = pnand %p4170_p11, %p4167_p10 }
  0x9c   :  { %4175 = shalt.err (!%p4172_p12)
}
  0x9d   :  { %s4176_s7 = scalar_lea.vmem %s208_s22, 16  ;;  %s4180_s10 = scalar_lea.vmem %s208_s22, 32 }
  0x9e   :  { %p4177_p13 = scmp.ne.s32.totalorder %s208_s22, %s4176_s7  ;;  %p4181_p0 = scmp.lt.s32.totalorder %s208_s22, %s208_s22 }
  0x9f   :  { %p4182_p1 = scmp.lt.s32.totalorder %s4180_s10, %s4176_s7 }
  0xa1   :  { %p4183_p2 = por %p4182_p1, %p4181_p0 }
  0xa3   :  { %p4184_p3 = pnand %p4183_p2, %p4177_p13 }
  0xa5   :  { %4187 = shalt.err (!%p4184_p3)
}
  0xa6   :  { %210 = dma.hbm_to_vmem [thread:$0]  %s4992_s30, 16, %s208_s22, [#allocation15]  }
  0xa7   :  { %s4188_s14 = scalar_lea.hbm %s5012_s27, 512 }
  0xa8   :  { %p4189_p4 = scmp.ne.s32.totalorder %s5012_s27, %s4188_s14  ;;  %p4192_p5 = scmp.lt.u32.totalorder %s4188_s14, %s5012_s27 }
  0xaa   :  { %p4194_p6 = pnand %p4192_p5, %p4189_p4 }
  0xac   :  { %4197 = shalt.err (!%p4194_p6)
}
  0xad   :  { %s4198_s11 = scalar_lea.vmem %s231_s26, 512  ;;  %p4203_p8 = scmp.lt.s32.totalorder %s231_s26, %s231_s26 }
  0xae   :  { %p4199_p7 = scmp.ne.s32.totalorder %s231_s26, %s4198_s11  ;;  %p4204_p9 = scmp.lt.s32.totalorder %s4198_s11, %s4198_s11 }
  0xb0   :  { %p4205_p10 = por %p4204_p9, %p4203_p8 }
  0xb2   :  { %p4206_p11 = pnand %p4205_p10, %p4199_p7 }
  0xb4   :  { %4209 = shalt.err (!%p4206_p11)
}
  0xb5   :  { %236 = dma.hbm_to_vmem [thread:$0]  %s5012_s27, 512, %s231_s26, [#allocation18], %s4888_s28, %s4888_s28, %s4889_s1  }
  0xb6   :  { %s4894_s30 = smov [#allocation20]   ;;  %s4895_s16 = smov [#allocation23]  }
  0xb7   :  { %s252_s15 = sshll.u32 %s4894_s30, 4  ;;  %s274_s9 = sshll.u32 %s4895_s16, 4  ;;  %s253_s15 = int_to_ptr.vmem [resolvable:$true] %s252_s15  ;;  %s275_s9 = int_to_ptr.vmem [resolvable:$true] %s274_s9 }
  0xb8   :  { %s4210_s18 = scalar_lea.hbm %s5022_s6, 512 }
  0xb9   :  { %p4211_p12 = scmp.ne.s32.totalorder %s5022_s6, %s4210_s18  ;;  %p4214_p13 = scmp.lt.u32.totalorder %s4210_s18, %s5022_s6 }
  0xbb   :  { %p4216_p0 = pnand %p4214_p13, %p4211_p12 }
  0xbd   :  { %4219 = shalt.err (!%p4216_p0)
}
  0xbe   :  { %s4220_s0 = scalar_lea.vmem %s253_s15, 512  ;;  %p4225_p2 = scmp.lt.s32.totalorder %s253_s15, %s253_s15 }
  0xbf   :  { %p4221_p1 = scmp.ne.s32.totalorder %s253_s15, %s4220_s0  ;;  %p4226_p3 = scmp.lt.s32.totalorder %s4220_s0, %s4220_s0 }
  0xc1   :  { %p4227_p4 = por %p4226_p3, %p4225_p2 }
  0xc3   :  { %p4228_p5 = pnand %p4227_p4, %p4221_p1 }
  0xc5   :  { %4231 = shalt.err (!%p4228_p5)
}
  0xc6   :  { %258 = dma.hbm_to_vmem [thread:$0]  %s5022_s6, 512, %s253_s15, [#allocation21], %s4888_s28, %s4888_s28, %s4889_s1  }
  0xc7   :  { %s4232_s27 = scalar_lea.hbm %s5032_s24, 512 }
  0xc8   :  { %p4233_p6 = scmp.ne.s32.totalorder %s5032_s24, %s4232_s27  ;;  %p4236_p7 = scmp.lt.u32.totalorder %s4232_s27, %s5032_s24 }
  0xca   :  { %p4238_p8 = pnand %p4236_p7, %p4233_p6 }
  0xcc   :  { %4241 = shalt.err (!%p4238_p8)
}
  0xcd   :  { %s4242_s25 = scalar_lea.vmem %s275_s9, 512  ;;  %p4247_p10 = scmp.lt.s32.totalorder %s275_s9, %s275_s9 }
  0xce   :  { %p4243_p9 = scmp.ne.s32.totalorder %s275_s9, %s4242_s25  ;;  %p4248_p11 = scmp.lt.s32.totalorder %s4242_s25, %s4242_s25 }
  0xd0   :  { %p4249_p12 = por %p4248_p11, %p4247_p10 }
  0xd2   :  { %p4250_p13 = pnand %p4249_p12, %p4243_p9 }
  0xd4   :  { %4253 = shalt.err (!%p4250_p13)
}
  0xd5   :  { %280 = dma.hbm_to_vmem [thread:$0]  %s5032_s24, 512, %s275_s9, [#allocation24], %s4888_s28, %s4888_s28, %s4889_s1  }
  0xd6   :  { %s4896_s6 = smov [#allocation26]   ;;  %s4897_s23 = smov [#allocation29]  }
  0xd7   :  { %s299_s22 = sshll.u32 %s4896_s6, 4  ;;  %s320_s26 = sshll.u32 %s4897_s23, 4  ;;  %s300_s22 = int_to_ptr.vmem [resolvable:$true] %s299_s22  ;;  %s321_s26 = int_to_ptr.vmem [resolvable:$true] %s320_s26 }
  0xd8   :  { %s4254_s2 = scalar_lea.hbm %s5042_s13, 16 }
  0xd9   :  { %p4255_p0 = scmp.ne.s32.totalorder %s5042_s13, %s4254_s2  ;;  %p4258_p1 = scmp.lt.u32.totalorder %s4254_s2, %s5042_s13 }
  0xdb   :  { %p4260_p2 = pnand %p4258_p1, %p4255_p0 }
  0xdd   :  { %4263 = shalt.err (!%p4260_p2)
}
  0xde   :  { %s4264_s7 = scalar_lea.vmem %s300_s22, 16  ;;  %s4268_s10 = scalar_lea.vmem %s300_s22, 32 }
  0xdf   :  { %p4265_p3 = scmp.ne.s32.totalorder %s300_s22, %s4264_s7  ;;  %p4269_p4 = scmp.lt.s32.totalorder %s300_s22, %s300_s22 }
  0xe0   :  { %p4270_p5 = scmp.lt.s32.totalorder %s4268_s10, %s4264_s7 }
  0xe2   :  { %p4271_p6 = por %p4270_p5, %p4269_p4 }
  0xe4   :  { %p4272_p7 = pnand %p4271_p6, %p4265_p3 }
  0xe6   :  { %4275 = shalt.err (!%p4272_p7)
}
  0xe7   :  { %302 = dma.hbm_to_vmem [thread:$0]  %s5042_s13, 16, %s300_s22, [#allocation27]  }
  0xe8   :  { %s4276_s24 = scalar_lea.hbm %s5057_s3, 512 }
  0xe9   :  { %p4277_p8 = scmp.ne.s32.totalorder %s5057_s3, %s4276_s24  ;;  %p4280_p9 = scmp.lt.u32.totalorder %s4276_s24, %s5057_s3 }
  0xeb   :  { %p4282_p10 = pnand %p4280_p9, %p4277_p8 }
  0xed   :  { %4285 = shalt.err (!%p4282_p10)
}
  0xee   :  { %s4286_s14 = scalar_lea.vmem %s321_s26, 512  ;;  %p4291_p12 = scmp.lt.s32.totalorder %s321_s26, %s321_s26 }
  0xef   :  { %p4287_p11 = scmp.ne.s32.totalorder %s321_s26, %s4286_s14  ;;  %p4292_p13 = scmp.lt.s32.totalorder %s4286_s14, %s4286_s14 }
  0xf1   :  { %p4293_p0 = por %p4292_p13, %p4291_p12 }
  0xf3   :  { %p4294_p1 = pnand %p4293_p0, %p4287_p11 }
  0xf5   :  { %4297 = shalt.err (!%p4294_p1)
}
  0xf6   :  { %326 = dma.hbm_to_vmem [thread:$0]  %s5057_s3, 512, %s321_s26, [#allocation30], %s4888_s28, %s4888_s28, %s4889_s1  }
  0xf7   :  { %s4898_s13 = smov [#allocation32]   ;;  %s4899_s30 = smov [#allocation35]  }
  0xf8   :  { %s344_s11 = sshll.u32 %s4898_s13, 4  ;;  %s368_s15 = sshll.u32 %s4899_s30, 4  ;;  %s345_s11 = int_to_ptr.vmem [resolvable:$true] %s344_s11  ;;  %s369_s15 = int_to_ptr.vmem [resolvable:$true] %s368_s15 }
  0xf9   :  { %s4298_s16 = scalar_lea.hbm %s5067_s8, 512 }
  0xfa   :  { %p4299_p2 = scmp.ne.s32.totalorder %s5067_s8, %s4298_s16  ;;  %p4302_p3 = scmp.lt.u32.totalorder %s4298_s16, %s5067_s8 }
  0xfc   :  { %p4304_p4 = pnand %p4302_p3, %p4299_p2 }
  0xfe   :  { %4307 = shalt.err (!%p4304_p4)
}
  0xff   :  { %s4308_s9 = scalar_lea.vmem %s345_s11, 512  ;;  %p4313_p6 = scmp.lt.s32.totalorder %s345_s11, %s345_s11 }
 0x100   :  { %p4309_p5 = scmp.ne.s32.totalorder %s345_s11, %s4308_s9  ;;  %p4314_p7 = scmp.lt.s32.totalorder %s4308_s9, %s4308_s9 }
 0x102   :  { %p4315_p8 = por %p4314_p7, %p4313_p6 }
 0x104   :  { %p4316_p9 = pnand %p4315_p8, %p4309_p5 }
 0x106   :  { %4319 = shalt.err (!%p4316_p9)
}
 0x107   :  { %350 = dma.hbm_to_vmem [thread:$0]  %s5067_s8, 512, %s345_s11, [#allocation33], %s4888_s28, %s4888_s28, %s4889_s1  }
 0x108   :  { %s4320_s3 = scalar_lea.hbm %s5077_s4, 512 }
 0x109   :  { %p4321_p10 = scmp.ne.s32.totalorder %s5077_s4, %s4320_s3  ;;  %p4324_p11 = scmp.lt.u32.totalorder %s4320_s3, %s5077_s4 }
 0x10b   :  { %p4326_p12 = pnand %p4324_p11, %p4321_p10 }
 0x10d   :  { %4329 = shalt.err (!%p4326_p12)
}
 0x10e   :  { %s4330_s18 = scalar_lea.vmem %s369_s15, 512  ;;  %p4335_p0 = scmp.lt.s32.totalorder %s369_s15, %s369_s15 }
 0x10f   :  { %p4331_p13 = scmp.ne.s32.totalorder %s369_s15, %s4330_s18  ;;  %p4336_p1 = scmp.lt.s32.totalorder %s4330_s18, %s4330_s18 }
 0x111   :  { %p4337_p2 = por %p4336_p1, %p4335_p0 }
 0x113   :  { %p4338_p3 = pnand %p4337_p2, %p4331_p13 }
 0x115   :  { %4341 = shalt.err (!%p4338_p3)
}
 0x116   :  { %374 = dma.hbm_to_vmem [thread:$0]  %s5077_s4, 512, %s369_s15, [#allocation36], %s4888_s28, %s4888_s28, %s4889_s1  }
 0x117   :  { %s4900_s8 = smov [#allocation38]   ;;  %s4901_s27 = smov [#allocation41]  }
 0x118   :  { %s397_s0 = sshll.u32 %s4900_s8, 4  ;;  %s418_s25 = sshll.u32 %s4901_s27, 4  ;;  %s398_s0 = int_to_ptr.vmem [resolvable:$true] %s397_s0  ;;  %s419_s25 = int_to_ptr.vmem [resolvable:$true] %s418_s25 }
 0x119   :  { %s4342_s6 = scalar_lea.hbm %s5102_s20, 16 }
 0x11a   :  { %p4343_p4 = scmp.ne.s32.totalorder %s5102_s20, %s4342_s6  ;;  %p4346_p5 = scmp.lt.u32.totalorder %s4342_s6, %s5102_s20 }
 0x11c   :  { %p4348_p6 = pnand %p4346_p5, %p4343_p4 }
 0x11e   :  { %4351 = shalt.err (!%p4348_p6)
}
 0x11f   :  { %s4352_s22 = scalar_lea.vmem %s398_s0, 16  ;;  %s4356_s23 = scalar_lea.vmem %s398_s0, 32 }
 0x120   :  { %p4353_p7 = scmp.ne.s32.totalorder %s398_s0, %s4352_s22  ;;  %p4357_p8 = scmp.lt.s32.totalorder %s398_s0, %s398_s0 }
 0x121   :  { %p4358_p9 = scmp.lt.s32.totalorder %s4356_s23, %s4352_s22 }
 0x123   :  { %p4359_p10 = por %p4358_p9, %p4357_p8 }
 0x125   :  { %p4360_p11 = pnand %p4359_p10, %p4353_p7 }
 0x127   :  { %4363 = shalt.err (!%p4360_p11)
}
 0x128   :  { %400 = dma.hbm_to_vmem [thread:$0]  %s5102_s20, 16, %s398_s0, [#allocation39]  }
 0x129   :  { %s4364_s4 = scalar_lea.hbm %s5112_s17, 512 }
 0x12a   :  { %p4365_p12 = scmp.ne.s32.totalorder %s5112_s17, %s4364_s4  ;;  %p4368_p13 = scmp.lt.u32.totalorder %s4364_s4, %s5112_s17 }
 0x12c   :  { %p4370_p0 = pnand %p4368_p13, %p4365_p12 }
 0x12e   :  { %4373 = shalt.err (!%p4370_p0)
}
 0x12f   :  { %s4374_s26 = scalar_lea.vmem %s419_s25, 512  ;;  %p4379_p2 = scmp.lt.s32.totalorder %s419_s25, %s419_s25 }
 0x130   :  { %p4375_p1 = scmp.ne.s32.totalorder %s419_s25, %s4374_s26  ;;  %p4380_p3 = scmp.lt.s32.totalorder %s4374_s26, %s4374_s26 }
 0x132   :  { %p4381_p4 = por %p4380_p3, %p4379_p2 }
 0x134   :  { %p4382_p5 = pnand %p4381_p4, %p4375_p1 }
 0x136   :  { %4385 = shalt.err (!%p4382_p5)
}
 0x137   :  { %424 = dma.hbm_to_vmem [thread:$0]  %s5112_s17, 512, %s419_s25, [#allocation42], %s4888_s28, %s4888_s28, %s4889_s1  }
 0x138   :  { %s4902_s20 = smov [#allocation44]   ;;  %s4903_s7 = smov [#allocation2]  }
 0x139   :  { %s442_s2 = sshll.u32 %s4902_s20, 4  ;;  %s125_s10 = sshll.u32 %s4903_s7, 4  ;;  %s443_s2 = int_to_ptr.vmem [resolvable:$true] %s442_s2  ;;  %s126_s10 = int_to_ptr.vmem [resolvable:$true] %s125_s10 }
 0x13a   :  { %s4386_s24 = scalar_lea.hbm %s5122_s29, 512 }
 0x13b   :  { %p4387_p6 = scmp.ne.s32.totalorder %s5122_s29, %s4386_s24  ;;  %p4390_p7 = scmp.lt.u32.totalorder %s4386_s24, %s5122_s29 }
 0x13d   :  { %p4392_p8 = pnand %p4390_p7, %p4387_p6 }
 0x13f   :  { %4395 = shalt.err (!%p4392_p8)
}
 0x140   :  { %s4396_s14 = scalar_lea.vmem %s443_s2, 512  ;;  %p4401_p10 = scmp.lt.s32.totalorder %s443_s2, %s443_s2 }
 0x141   :  { %p4397_p9 = scmp.ne.s32.totalorder %s443_s2, %s4396_s14  ;;  %p4402_p11 = scmp.lt.s32.totalorder %s4396_s14, %s4396_s14 }
 0x143   :  { %p4403_p12 = por %p4402_p11, %p4401_p10 }
 0x145   :  { %p4404_p13 = pnand %p4403_p12, %p4397_p9 }
 0x147   :  { %4407 = shalt.err (!%p4404_p13)
}
 0x148   :  { %s5658_s17 = sld [smem:[#allocation70_spill]] }
 0x149   :  { %448 = dma.hbm_to_vmem [thread:$0]  %s5122_s29, 512, %s443_s2, [#allocation45], %s4888_s28, %s4888_s28, %s4889_s1  }
 0x14e   :  { %s4408_s13 = scalar_lea.hbm %s5658_s17, 128 }
 0x14f   :  { %p4409_p0 = scmp.ne.s32.totalorder %s5658_s17, %s4408_s13  ;;  %p4412_p1 = scmp.lt.u32.totalorder %s4408_s13, %s5658_s17 }
 0x151   :  { %p4414_p2 = pnand %p4412_p1, %p4409_p0 }
 0x153   :  { %4417 = shalt.err (!%p4414_p2)
}
 0x154   :  { %s4418_s11 = scalar_lea.vmem %s126_s10, 128  ;;  %p4423_p4 = scmp.lt.s32.totalorder %s126_s10, %s126_s10 }
 0x155   :  { %p4419_p3 = scmp.ne.s32.totalorder %s126_s10, %s4418_s11  ;;  %p4424_p5 = scmp.lt.s32.totalorder %s4418_s11, %s4418_s11 }
 0x157   :  { %p4425_p6 = por %p4424_p5, %p4423_p4 }
 0x159   :  { %p4426_p7 = pnand %p4425_p6, %p4419_p3 }
 0x15b   :  { %4429 = shalt.err (!%p4426_p7)
}
 0x15c   :  { %s5659_s30 = sld [smem:[#allocation73_spill]]  ;;  %s4904_s15 = smov [#allocation7]  }
 0x15d   :  { %128 = dma.hbm_to_vmem [thread:$0]  %s5658_s17, 128, %s126_s10, [#allocation3]  }
 0x15e   :  { %s151_s29 = sshll.u32 %s4904_s15, 4  ;;  %s4905_s16 = smov [#allocation10]   ;;  %s152_s29 = int_to_ptr.vmem [resolvable:$true] %s151_s29 }
 0x15f   :  { %s171_s9 = sshll.u32 %s4905_s16, 4  ;;  %s172_s9 = int_to_ptr.vmem [resolvable:$true] %s171_s9 }
 0x162   :  { %s4430_s3 = scalar_lea.hbm %s5659_s30, 128 }
 0x163   :  { %p4431_p8 = scmp.ne.s32.totalorder %s5659_s30, %s4430_s3  ;;  %p4434_p9 = scmp.lt.u32.totalorder %s4430_s3, %s5659_s30 }
 0x165   :  { %p4436_p10 = pnand %p4434_p9, %p4431_p8 }
 0x167   :  { %4439 = shalt.err (!%p4436_p10)
}
 0x168   :  { %s4440_s18 = scalar_lea.vmem %s152_s29, 128  ;;  %p4445_p12 = scmp.lt.s32.totalorder %s152_s29, %s152_s29 }
 0x169   :  { %p4441_p11 = scmp.ne.s32.totalorder %s152_s29, %s4440_s18  ;;  %p4446_p13 = scmp.lt.s32.totalorder %s4440_s18, %s4440_s18 }
 0x16b   :  { %p4447_p0 = por %p4446_p13, %p4445_p12 }
 0x16d   :  { %p4448_p1 = pnand %p4447_p0, %p4441_p11 }
 0x16f   :  { %4451 = shalt.err (!%p4448_p1)
}
 0x170   :  { %s5660_s8 = sld [smem:[#allocation74_spill]] }
 0x171   :  { %154 = dma.hbm_to_vmem [thread:$0]  %s5659_s30, 128, %s152_s29, [#allocation6]  }
 0x176   :  { %s4452_s0 = scalar_lea.hbm %s5660_s8, 128 }
 0x177   :  { %p4453_p2 = scmp.ne.s32.totalorder %s5660_s8, %s4452_s0  ;;  %p4456_p3 = scmp.lt.u32.totalorder %s4452_s0, %s5660_s8 }
 0x179   :  { %p4458_p4 = pnand %p4456_p3, %p4453_p2 }
 0x17b   :  { %4461 = shalt.err (!%p4458_p4)
}
 0x17c   :  { %s4462_s27 = scalar_lea.vmem %s172_s9, 128  ;;  %p4467_p6 = scmp.lt.s32.totalorder %s172_s9, %s172_s9 }
 0x17d   :  { %p4463_p5 = scmp.ne.s32.totalorder %s172_s9, %s4462_s27  ;;  %p4468_p7 = scmp.lt.s32.totalorder %s4462_s27, %s4462_s27 }
 0x17f   :  { %p4469_p8 = por %p4468_p7, %p4467_p6 }
 0x181   :  { %p4470_p9 = pnand %p4469_p8, %p4463_p5 }
 0x183   :  { %4473 = shalt.err (!%p4470_p9)
}
 0x184   :  { %s5661_s25 = sld [smem:[#allocation77_spill]]  ;;  %s4906_s6 = smov [#allocation13]  }
 0x185   :  { %174 = dma.hbm_to_vmem [thread:$0]  %s5660_s8, 128, %s172_s9, [#allocation9]  }
 0x186   :  { %s195_s22 = sshll.u32 %s4906_s6, 4  ;;  %s4907_s23 = smov [#allocation16]   ;;  %s196_s22 = int_to_ptr.vmem [resolvable:$true] %s195_s22 }
 0x187   :  { %s219_s4 = sshll.u32 %s4907_s23, 4  ;;  %s220_s4 = int_to_ptr.vmem [resolvable:$true] %s219_s4 }
 0x18a   :  { %s4474_s26 = scalar_lea.hbm %s5661_s25, 128 }
 0x18b   :  { %p4475_p10 = scmp.ne.s32.totalorder %s5661_s25, %s4474_s26  ;;  %p4478_p11 = scmp.lt.u32.totalorder %s4474_s26, %s5661_s25 }
 0x18d   :  { %p4480_p12 = pnand %p4478_p11, %p4475_p10 }
 0x18f   :  { %4483 = shalt.err (!%p4480_p12)
}
 0x190   :  { %s4484_s20 = scalar_lea.vmem %s196_s22, 128  ;;  %p4489_p0 = scmp.lt.s32.totalorder %s196_s22, %s196_s22 }
 0x191   :  { %p4485_p13 = scmp.ne.s32.totalorder %s196_s22, %s4484_s20  ;;  %p4490_p1 = scmp.lt.s32.totalorder %s4484_s20, %s4484_s20 }
 0x193   :  { %p4491_p2 = por %p4490_p1, %p4489_p0 }
 0x195   :  { %p4492_p3 = pnand %p4491_p2, %p4485_p13 }
 0x197   :  { %4495 = shalt.err (!%p4492_p3)
}
 0x198   :  { %s5662_s2 = sld [smem:[#allocation80_spill]] }
 0x199   :  { %198 = dma.hbm_to_vmem [thread:$0]  %s5661_s25, 128, %s196_s22, [#allocation12]  }
 0x19e   :  { %s4496_s7 = scalar_lea.hbm %s5662_s2, 16 }
 0x19f   :  { %p4497_p4 = scmp.ne.s32.totalorder %s5662_s2, %s4496_s7  ;;  %p4500_p5 = scmp.lt.u32.totalorder %s4496_s7, %s5662_s2 }
 0x1a1   :  { %p4502_p6 = pnand %p4500_p5, %p4497_p4 }
 0x1a3   :  { %4505 = shalt.err (!%p4502_p6)
}
 0x1a4   :  { %s4506_s10 = scalar_lea.vmem %s220_s4, 16  ;;  %s4510_s24 = scalar_lea.vmem %s220_s4, 32 }
 0x1a5   :  { %p4507_p7 = scmp.ne.s32.totalorder %s220_s4, %s4506_s10  ;;  %p4511_p8 = scmp.lt.s32.totalorder %s220_s4, %s220_s4 }
 0x1a6   :  { %p4512_p9 = scmp.lt.s32.totalorder %s4510_s24, %s4506_s10 }
 0x1a8   :  { %p4513_p10 = por %p4512_p9, %p4511_p8 }
 0x1aa   :  { %p4514_p11 = pnand %p4513_p10, %p4507_p7 }
 0x1ac   :  { %4517 = shalt.err (!%p4514_p11)
}
 0x1ad   :  { %s5663_s14 = sld [smem:[#allocation82_spill]]  ;;  %s4908_s17 = smov [#allocation19]  }
 0x1ae   :  { %222 = dma.hbm_to_vmem [thread:$0]  %s5662_s2, 16, %s220_s4, [#allocation15]  }
 0x1af   :  { %s243_s13 = sshll.u32 %s4908_s17, 4  ;;  %s4909_s11 = smov [#allocation22]   ;;  %s244_s13 = int_to_ptr.vmem [resolvable:$true] %s243_s13 }
 0x1b0   :  { %s265_s30 = sshll.u32 %s4909_s11, 4  ;;  %s266_s30 = int_to_ptr.vmem [resolvable:$true] %s265_s30 }
 0x1b3   :  { %s4518_s15 = scalar_lea.hbm %s5663_s14, 16 }
 0x1b4   :  { %p4519_p12 = scmp.ne.s32.totalorder %s5663_s14, %s4518_s15  ;;  %p4522_p13 = scmp.lt.u32.totalorder %s4518_s15, %s5663_s14 }
 0x1b6   :  { %p4524_p0 = pnand %p4522_p13, %p4519_p12 }
 0x1b8   :  { %4527 = shalt.err (!%p4524_p0)
}
 0x1b9   :  { %s4528_s29 = scalar_lea.vmem %s244_s13, 16  ;;  %s4532_s16 = scalar_lea.vmem %s244_s13, 32 }
 0x1ba   :  { %p4529_p1 = scmp.ne.s32.totalorder %s244_s13, %s4528_s29  ;;  %p4533_p2 = scmp.lt.s32.totalorder %s244_s13, %s244_s13 }
 0x1bb   :  { %p4534_p3 = scmp.lt.s32.totalorder %s4532_s16, %s4528_s29 }
 0x1bd   :  { %p4535_p4 = por %p4534_p3, %p4533_p2 }
 0x1bf   :  { %p4536_p5 = pnand %p4535_p4, %p4529_p1 }
 0x1c1   :  { %4539 = shalt.err (!%p4536_p5)
}
 0x1c2   :  { %s5664_s9 = sld [smem:[#allocation83_spill]] }
 0x1c3   :  { %246 = dma.hbm_to_vmem [thread:$0]  %s5663_s14, 16, %s244_s13, [#allocation18]  }
 0x1c8   :  { %s4540_s3 = scalar_lea.hbm %s5664_s9, 16 }
 0x1c9   :  { %p4541_p6 = scmp.ne.s32.totalorder %s5664_s9, %s4540_s3  ;;  %p4544_p7 = scmp.lt.u32.totalorder %s4540_s3, %s5664_s9 }
 0x1cb   :  { %p4546_p8 = pnand %p4544_p7, %p4541_p6 }
 0x1cd   :  { %4549 = shalt.err (!%p4546_p8)
}
 0x1ce   :  { %s4550_s18 = scalar_lea.vmem %s266_s30, 16  ;;  %s4554_s8 = scalar_lea.vmem %s266_s30, 32 }
 0x1cf   :  { %p4551_p9 = scmp.ne.s32.totalorder %s266_s30, %s4550_s18  ;;  %p4555_p10 = scmp.lt.s32.totalorder %s266_s30, %s266_s30 }
 0x1d0   :  { %p4556_p11 = scmp.lt.s32.totalorder %s4554_s8, %s4550_s18 }
 0x1d2   :  { %p4557_p12 = por %p4556_p11, %p4555_p10 }
 0x1d4   :  { %p4558_p13 = pnand %p4557_p12, %p4551_p9 }
 0x1d6   :  { %4561 = shalt.err (!%p4558_p13)
}
 0x1d7   :  { %s5665_s0 = sld [smem:[#allocation84_spill]]  ;;  %s4910_s27 = smov [#allocation25]  }
 0x1d8   :  { %268 = dma.hbm_to_vmem [thread:$0]  %s5664_s9, 16, %s266_s30, [#allocation21]  }
 0x1d9   :  { %s286_s25 = sshll.u32 %s4910_s27, 4  ;;  %s4911_s6 = smov [#allocation28]   ;;  %s287_s25 = int_to_ptr.vmem [resolvable:$true] %s286_s25 }
 0x1da   :  { %s311_s22 = sshll.u32 %s4911_s6, 4  ;;  %s312_s22 = int_to_ptr.vmem [resolvable:$true] %s311_s22 }
 0x1dd   :  { %s4562_s23 = scalar_lea.hbm %s5665_s0, 512 }
 0x1de   :  { %p4563_p0 = scmp.ne.s32.totalorder %s5665_s0, %s4562_s23  ;;  %p4566_p1 = scmp.lt.u32.totalorder %s4562_s23, %s5665_s0 }
 0x1e0   :  { %p4568_p2 = pnand %p4566_p1, %p4563_p0 }
 0x1e2   :  { %4571 = shalt.err (!%p4568_p2)
}
 0x1e3   :  { %s4572_s4 = scalar_lea.vmem %s287_s25, 512  ;;  %p4577_p4 = scmp.lt.s32.totalorder %s287_s25, %s287_s25 }
 0x1e4   :  { %p4573_p3 = scmp.ne.s32.totalorder %s287_s25, %s4572_s4  ;;  %p4578_p5 = scmp.lt.s32.totalorder %s4572_s4, %s4572_s4 }
 0x1e6   :  { %p4579_p6 = por %p4578_p5, %p4577_p4 }
 0x1e8   :  { %p4580_p7 = pnand %p4579_p6, %p4573_p3 }
 0x1ea   :  { %4583 = shalt.err (!%p4580_p7)
}
 0x1eb   :  { %s5666_s26 = sld [smem:[#allocation86_spill]] }
 0x1ec   :  { %292 = dma.hbm_to_vmem [thread:$0]  %s5665_s0, 512, %s287_s25, [#allocation24], %s4888_s28, %s4888_s28, %s4889_s1  }
 0x1f1   :  { %s4584_s20 = scalar_lea.hbm %s5666_s26, 16 }
 0x1f2   :  { %p4585_p8 = scmp.ne.s32.totalorder %s5666_s26, %s4584_s20  ;;  %p4588_p9 = scmp.lt.u32.totalorder %s4584_s20, %s5666_s26 }
 0x1f4   :  { %p4590_p10 = pnand %p4588_p9, %p4585_p8 }
 0x1f6   :  { %4593 = shalt.err (!%p4590_p10)
}
 0x1f7   :  { %s4594_s2 = scalar_lea.vmem %s312_s22, 16  ;;  %s4598_s7 = scalar_lea.vmem %s312_s22, 32 }
 0x1f8   :  { %p4595_p11 = scmp.ne.s32.totalorder %s312_s22, %s4594_s2  ;;  %p4599_p12 = scmp.lt.s32.totalorder %s312_s22, %s312_s22 }
 0x1f9   :  { %p4600_p13 = scmp.lt.s32.totalorder %s4598_s7, %s4594_s2 }
 0x1fb   :  { %p4601_p0 = por %p4600_p13, %p4599_p12 }
 0x1fd   :  { %p4602_p1 = pnand %p4601_p0, %p4595_p11 }
 0x1ff   :  { %4605 = shalt.err (!%p4602_p1)
}
 0x200   :  { %s5667_s10 = sld [smem:[#allocation87_spill]]  ;;  %s4912_s24 = smov [#allocation31]  }
 0x201   :  { %314 = dma.hbm_to_vmem [thread:$0]  %s5666_s26, 16, %s312_s22, [#allocation27]  }
 0x202   :  { %s332_s14 = sshll.u32 %s4912_s24, 4  ;;  %s4913_s17 = smov [#allocation34]   ;;  %s333_s14 = int_to_ptr.vmem [resolvable:$true] %s332_s14 }
 0x203   :  { %s356_s13 = sshll.u32 %s4913_s17, 4  ;;  %s357_s13 = int_to_ptr.vmem [resolvable:$true] %s356_s13 }
 0x206   :  { %s4606_s11 = scalar_lea.hbm %s5667_s10, 512 }
 0x207   :  { %p4607_p2 = scmp.ne.s32.totalorder %s5667_s10, %s4606_s11  ;;  %p4610_p3 = scmp.lt.u32.totalorder %s4606_s11, %s5667_s10 }
 0x209   :  { %p4612_p4 = pnand %p4610_p3, %p4607_p2 }
 0x20b   :  { %4615 = shalt.err (!%p4612_p4)
}
 0x20c   :  { %s4616_s30 = scalar_lea.vmem %s333_s14, 512  ;;  %p4621_p6 = scmp.lt.s32.totalorder %s333_s14, %s333_s14 }
 0x20d   :  { %p4617_p5 = scmp.ne.s32.totalorder %s333_s14, %s4616_s30  ;;  %p4622_p7 = scmp.lt.s32.totalorder %s4616_s30, %s4616_s30 }
 0x20f   :  { %p4623_p8 = por %p4622_p7, %p4621_p6 }
 0x211   :  { %p4624_p9 = pnand %p4623_p8, %p4617_p5 }
 0x213   :  { %4627 = shalt.err (!%p4624_p9)
}
 0x214   :  { %s5668_s15 = sld [smem:[#allocation88_spill]] }
 0x215   :  { %338 = dma.hbm_to_vmem [thread:$0]  %s5667_s10, 512, %s333_s14, [#allocation30], %s4888_s28, %s4888_s28, %s4889_s1  }
 0x21a   :  { %s4628_s29 = scalar_lea.hbm %s5668_s15, 512 }
 0x21b   :  { %p4629_p10 = scmp.ne.s32.totalorder %s5668_s15, %s4628_s29  ;;  %p4632_p11 = scmp.lt.u32.totalorder %s4628_s29, %s5668_s15 }
 0x21d   :  { %p4634_p12 = pnand %p4632_p11, %p4629_p10 }
 0x21f   :  { %4637 = shalt.err (!%p4634_p12)
}
 0x220   :  { %s4638_s16 = scalar_lea.vmem %s357_s13, 512  ;;  %p4643_p0 = scmp.lt.s32.totalorder %s357_s13, %s357_s13 }
 0x221   :  { %p4639_p13 = scmp.ne.s32.totalorder %s357_s13, %s4638_s16  ;;  %p4644_p1 = scmp.lt.s32.totalorder %s4638_s16, %s4638_s16 }
 0x223   :  { %p4645_p2 = por %p4644_p1, %p4643_p0 }
 0x225   :  { %p4646_p3 = pnand %p4645_p2, %p4639_p13 }
 0x227   :  { %4649 = shalt.err (!%p4646_p3)
}
 0x228   :  { %s5669_s9 = sld [smem:[#allocation92_spill]]  ;;  %s4914_s3 = smov [#allocation37]  }
 0x229   :  { %362 = dma.hbm_to_vmem [thread:$0]  %s5668_s15, 512, %s357_s13, [#allocation33], %s4888_s28, %s4888_s28, %s4889_s1  }
 0x22a   :  { %s387_s18 = sshll.u32 %s4914_s3, 4  ;;  %s4915_s8 = smov [#allocation40]   ;;  %s388_s18 = int_to_ptr.vmem [resolvable:$true] %s387_s18 }
 0x22b   :  { %s406_s0 = sshll.u32 %s4915_s8, 4  ;;  %s407_s0 = int_to_ptr.vmem [resolvable:$true] %s406_s0 }
 0x22e   :  { %s4650_s27 = scalar_lea.hbm %s5669_s9, 16 }
 0x22f   :  { %p4651_p4 = scmp.ne.s32.totalorder %s5669_s9, %s4650_s27  ;;  %p4654_p5 = scmp.lt.u32.totalorder %s4650_s27, %s5669_s9 }
 0x231   :  { %p4656_p6 = pnand %p4654_p5, %p4651_p4 }
 0x233   :  { %4659 = shalt.err (!%p4656_p6)
}
 0x234   :  { %s4660_s25 = scalar_lea.vmem %s388_s18, 16  ;;  %s4664_s6 = scalar_lea.vmem %s388_s18, 32 }
 0x235   :  { %p4661_p7 = scmp.ne.s32.totalorder %s388_s18, %s4660_s25  ;;  %p4665_p8 = scmp.lt.s32.totalorder %s388_s18, %s388_s18 }
 0x236   :  { %p4666_p9 = scmp.lt.s32.totalorder %s4664_s6, %s4660_s25 }
 0x238   :  { %p4667_p10 = por %p4666_p9, %p4665_p8 }
 0x23a   :  { %p4668_p11 = pnand %p4667_p10, %p4661_p7 }
 0x23c   :  { %4671 = shalt.err (!%p4668_p11)
}
 0x23d   :  { %s5670_s22 = sld [smem:[#allocation93_spill]] }
 0x23e   :  { %390 = dma.hbm_to_vmem [thread:$0]  %s5669_s9, 16, %s388_s18, [#allocation36]  }
 0x243   :  { %s4672_s23 = scalar_lea.hbm %s5670_s22, 512 }
 0x244   :  { %p4673_p12 = scmp.ne.s32.totalorder %s5670_s22, %s4672_s23  ;;  %p4676_p13 = scmp.lt.u32.totalorder %s4672_s23, %s5670_s22 }
 0x246   :  { %p4678_p0 = pnand %p4676_p13, %p4673_p12 }
 0x248   :  { %4681 = shalt.err (!%p4678_p0)
}
 0x249   :  { %s4682_s4 = scalar_lea.vmem %s407_s0, 512  ;;  %p4687_p2 = scmp.lt.s32.totalorder %s407_s0, %s407_s0 }
 0x24a   :  { %p4683_p1 = scmp.ne.s32.totalorder %s407_s0, %s4682_s4  ;;  %p4688_p3 = scmp.lt.s32.totalorder %s4682_s4, %s4682_s4 }
 0x24c   :  { %p4689_p4 = por %p4688_p3, %p4687_p2 }
 0x24e   :  { %p4690_p5 = pnand %p4689_p4, %p4683_p1 }
 0x250   :  { %4693 = shalt.err (!%p4690_p5)
}
 0x251   :  { %s5671_s26 = sld [smem:[#allocation94_spill]]  ;;  %s4916_s20 = smov [#allocation43]  }
 0x252   :  { %412 = dma.hbm_to_vmem [thread:$0]  %s5670_s22, 512, %s407_s0, [#allocation39], %s4888_s28, %s4888_s28, %s4889_s1  }
 0x253   :  { %s430_s2 = sshll.u32 %s4916_s20, 4  ;;  %s4917_s7 = smov [#allocation46]   ;;  %s431_s2 = int_to_ptr.vmem [resolvable:$true] %s430_s2 }
 0x254   :  { %s456_s10 = sshll.u32 %s4917_s7, 4  ;;  %s457_s10 = int_to_ptr.vmem [resolvable:$true] %s456_s10 }
 0x257   :  { %s4694_s24 = scalar_lea.hbm %s5671_s26, 512 }
 0x258   :  { %p4695_p6 = scmp.ne.s32.totalorder %s5671_s26, %s4694_s24  ;;  %p4698_p7 = scmp.lt.u32.totalorder %s4694_s24, %s5671_s26 }
 0x25a   :  { %p4700_p8 = pnand %p4698_p7, %p4695_p6 }
 0x25c   :  { %4703 = shalt.err (!%p4700_p8)
}
 0x25d   :  { %s4704_s14 = scalar_lea.vmem %s431_s2, 512  ;;  %p4709_p10 = scmp.lt.s32.totalorder %s431_s2, %s431_s2 }
 0x25e   :  { %p4705_p9 = scmp.ne.s32.totalorder %s431_s2, %s4704_s14  ;;  %p4710_p11 = scmp.lt.s32.totalorder %s4704_s14, %s4704_s14 }
 0x260   :  { %p4711_p12 = por %p4710_p11, %p4709_p10 }
 0x262   :  { %p4712_p13 = pnand %p4711_p12, %p4705_p9 }
 0x264   :  { %4715 = shalt.err (!%p4712_p13)
}
 0x265   :  { %s5672_s17 = sld [smem:[#allocation96_spill]] }
 0x266   :  { %436 = dma.hbm_to_vmem [thread:$0]  %s5671_s26, 512, %s431_s2, [#allocation42], %s4888_s28, %s4888_s28, %s4889_s1  }
 0x26b   :  { %s4716_s13 = scalar_lea.hbm %s5672_s17, 512 }
 0x26c   :  { %p4717_p0 = scmp.ne.s32.totalorder %s5672_s17, %s4716_s13  ;;  %p4720_p1 = scmp.lt.u32.totalorder %s4716_s13, %s5672_s17 }
 0x26e   :  { %p4722_p2 = pnand %p4720_p1, %p4717_p0 }
 0x270   :  { %4725 = shalt.err (!%p4722_p2)
}
 0x271   :  { %s4726_s11 = scalar_lea.vmem %s457_s10, 512  ;;  %p4731_p4 = scmp.lt.s32.totalorder %s457_s10, %s457_s10 }
 0x272   :  { %p4727_p3 = scmp.ne.s32.totalorder %s457_s10, %s4726_s11  ;;  %p4732_p5 = scmp.lt.s32.totalorder %s4726_s11, %s4726_s11 }
 0x274   :  { %p4733_p6 = por %p4732_p5, %p4731_p4 }
 0x276   :  { %p4734_p7 = pnand %p4733_p6, %p4727_p3 }
 0x278   :  { %4737 = shalt.err (!%p4734_p7)
}
 0x279   :  { %462 = dma.hbm_to_vmem [thread:$0]  %s5672_s17, 512, %s457_s10, [#allocation45], %s4888_s28, %s4888_s28, %s4889_s1  }
 0x27a   :  { %s4918_s30 = smov [#allocation47]   ;;  %s4738_s29 = scalar_lea.hbm %s5157_s19, 512 }
 0x27b   :  { %s476_s15 = sshll.u32 %s4918_s30, 4  ;;  %p4739_p8 = scmp.ne.s32.totalorder %s5157_s19, %s4738_s29  ;;  %s477_s15 = int_to_ptr.vmem [resolvable:$true] %s476_s15 }
 0x27c   :  { %p4742_p9 = scmp.lt.u32.totalorder %s4738_s29, %s5157_s19 }
 0x27e   :  { %p4744_p10 = pnand %p4742_p9, %p4739_p8 }
 0x280   :  { %4747 = shalt.err (!%p4744_p10)
}
 0x281   :  { %s4748_s16 = scalar_lea.vmem %s477_s15, 512  ;;  %p4753_p12 = scmp.lt.s32.totalorder %s477_s15, %s477_s15 }
 0x282   :  { %p4749_p11 = scmp.ne.s32.totalorder %s477_s15, %s4748_s16  ;;  %p4754_p13 = scmp.lt.s32.totalorder %s4748_s16, %s4748_s16 }
 0x284   :  { %p4755_p0 = por %p4754_p13, %p4753_p12 }
 0x286   :  { %p4756_p1 = pnand %p4755_p0, %p4749_p11 }
 0x288   :  { %4759 = shalt.err (!%p4756_p1)
}
 0x289   :  { %482 = dma.hbm_to_vmem [thread:$0]  %s5157_s19, 512, %s477_s15, [#allocation48], %s4888_s28, %s4888_s28, %s4889_s1  }
 0x28a   :  { %4804 = dma.done.wait [#allocation3], 128  }
 0x28b   :  { %4805 = vsyncadd [#allocation3], 4294967168 }
 0x28c   :  { %4806 = dma.done.wait [#allocation6], 384  }
 0x28d   :  { %4807 = vsyncadd [#allocation6], 4294966912 }
 0x28e   :  { %4808 = dma.done.wait [#allocation9], 256  }
 0x28f   :  { %4809 = vsyncadd [#allocation9], 4294967040 }
 0x290   :  { %4810 = dma.done.wait [#allocation12], 144  }
 0x291   :  { %4811 = vsyncadd [#allocation12], 4294967152 }
 0x292   :  { %4812 = dma.done.wait [#allocation15], 32  }
 0x293   :  { %4813 = vsyncadd [#allocation15], 4294967264 }
 0x294   :  { %4814 = dma.done.wait [#allocation18], 528  }
 0x295   :  { %4815 = vsyncadd [#allocation18], 4294966768 }
 0x296   :  { %4816 = dma.done.wait [#allocation21], 528  }
 0x297   :  { %4817 = vsyncadd [#allocation21], 4294966768 }
 0x298   :  { %4818 = dma.done.wait [#allocation24], 1024  }
 0x299   :  { %4819 = vsyncadd [#allocation24], 4294966272 }
 0x29a   :  { %4820 = dma.done.wait [#allocation27], 32  }
 0x29b   :  { %4821 = vsyncadd [#allocation27], 4294967264 }
 0x29c   :  { %4822 = dma.done.wait [#allocation30], 1024  }
 0x29d   :  { %4823 = vsyncadd [#allocation30], 4294966272 }
 0x29e   :  { %4824 = dma.done.wait [#allocation33], 1024  }
 0x29f   :  { %4825 = vsyncadd [#allocation33], 4294966272 }
 0x2a0   :  { %4826 = dma.done.wait [#allocation36], 528  }
 0x2a1   :  { %4827 = vsyncadd [#allocation36], 4294966768 }
 0x2a2   :  { %4828 = dma.done.wait [#allocation39], 528  }
 0x2a3   :  { %4829 = vsyncadd [#allocation39], 4294966768 }
 0x2a4   :  { %4830 = dma.done.wait [#allocation42], 1024  }
 0x2a5   :  { %4831 = vsyncadd [#allocation42], 4294966272 }
 0x2a6   :  { %4832 = dma.done.wait [#allocation45], 1024  }
 0x2a7   :  { %4833 = vsyncadd [#allocation45], 4294966272 }
 0x2a8   :  { %4834 = dma.done.wait [#allocation48], 512  }
 0x2a9   :  { %4835 = vsyncadd [#allocation48], 4294966784  ;;  %s5673_s19 = sld [smem:[#allocation72_spill]]  ;;  %v4919_v0 = vmov 0.0   ;;  %s5674_s9 = sld [smem:[#allocation76_spill]]  ;;  %vm4920_vm0 = vmmov 0  }
 0x2aa   :  { %3528 = vmatprep.subr.mxu1 %v4919_v0  ;;  %3530 = vmatprep.mubr.msk.f32.mxu1 %vm4920_vm0, %v4919_v0  ;;  %vm602_vm1 = vcmask 64512   ;;  %v584_v1 = vld [vmem:[#allocation10] sm:$0xff]  ;;  %v5343_v2 = vld [vmem:[#allocation2] sm:$0xff]  ;;  %s5675_s3 = sld [smem:[#allocation71_spill]]  ;;  %s5676_s18 = sld [smem:[#allocation75_spill]]  ;;  %vm960_vm2 = vcmask 261120  }
 0x2ab   :  { %3523 = vmatprep.subr.mxu0 %v4919_v0  ;;  %3525 = vmatprep.mubr.msk.f32.mxu0 %vm4920_vm0, %v4919_v0  ;;  %v583_v3 = vld [vmem:[#allocation8] sm:$0xff]  ;;  %s5677_s8 = sld [smem:[#allocation78_spill]]  ;;  %v4921_v35 = vmov 0.0|0.0   ;;  %v3313_v42 = vld [vmem:[#allocation11] ss:$0 sm:$0xff]  ;;  %s5678_s0 = sld [smem:[#allocation79_spill]] }
 0x2ac   :  { %3529 = vmatpush3.msra.mxu1 %v584_v1  ;;  %3524 = vmatpush3.msra.mxu0 %v583_v3  ;;  %v5411_v57 = vld [vmem:[#allocation7] sm:$0xff]  ;;  %s5679_s27 = sld [smem:[#allocation81_spill]]  ;;  %s5680_s25 = sld [smem:[#allocation85_spill]] }
 0x2ad   :  { %3531 = vmatmul.mubr.msk.f32.vlgmr.msra.gmra.mrb[0].mxu1 %vm602_vm1, %v5343_v2  ;;  %3526 = vmatmul.mubr.msk.f32.vlgmr.msra.gmra.mrb[0].mxu0 %vm602_vm1, %v5343_v2  ;;  %v591_v58 = vld [vmem:[#allocation13] sm:$0xff]  ;;  %s5681_s6 = sld [smem:[#allocation89_spill]]  ;;  %s5682_s22 = sld [smem:[#allocation95_spill]] }
 0x2ae   :  { %s5683_s23 = sld [smem:[#allocation90_spill]]  ;;  %s5684_s4 = sld [smem:[#allocation91_spill]] }
 0x2af   :  { %v5350_v4 = vld [vmem:[%s5673_s19] sm:$0xff]  ;;  %v587_v6 = vld [vmem:[%s5674_s9 + $0x8] sm:$0xff]  ;;  %v5360_v13 = vld [vmem:[%s5673_s19 + $0x10] sm:$0xff]  ;;  %s5685_s26 = sld [smem:[#allocation97_spill]]  ;;  %s5686_s20 = sld [smem:[#allocation98_spill]] }
 0x2b0   :  { %3535 = vmatprep.mubr.msk.f32.mxu0 %vm602_vm1, %v5350_v4  ;;  %v586_v5 = vld [vmem:[%s5674_s9] sm:$0xff]  ;;  %v5357_v10 = vld [vmem:[%s5673_s19 + $0x8] sm:$0xff]  ;;  %v5367_v14 = vld [vmem:[%s5673_s19 + $0x18] sm:$0xff]  ;;  %s5687_s2 = sld [smem:[#allocation99_spill]] }
 0x2b1   :  { %v3840_v7 = vpack.c.bf16 %v587_v6, %v586_v5  ;;  %v5370_v15 = vld [vmem:[%s5675_s3] sm:$0xff]  ;;  %v5377_v16 = vld [vmem:[%s5675_s3 + $0x8] sm:$0xff]  ;;  %v5380_v17 = vld [vmem:[%s5675_s3 + $0x10] sm:$0xff] }
 0x2b2   :  { %v5387_v18 = vld [vmem:[%s5675_s3 + $0x18] sm:$0xff]  ;;  %v588_v19 = vld [vmem:[%s5674_s9 + $0x10] sm:$0xff]  ;;  %v3312_v22 = vld [vmem:[%s5676_s18] ss:$0 sm:$0xff] }
 0x2b3   :  { %3841 = vmatprep.subr.bf16.mxu1 %v3840_v7  ;;  %v589_v20 = vld [vmem:[%s5674_s9 + $0x18] sm:$0xff]  ;;  %v592_v36 = vld [vmem:[%s5677_s8] sm:$0xff]  ;;  %v593_v37 = vld [vmem:[%s5677_s8 + $0x8] sm:$0xff] }
 0x2b4   :  { %3843 = vmatpush3.bf16.msra.mxu1 %v3840_v7  ;;  %v3844_v21 = vpack.c.bf16 %v589_v20, %v588_v19  ;;  %v594_v38 = vld [vmem:[%s5677_s8 + $0x10] sm:$0xff]  ;;  %v3855_v39 = vpack.c.bf16 %v593_v37, %v592_v36  ;;  %v595_v40 = vld [vmem:[%s5677_s8 + $0x18] sm:$0xff]  ;;  %v597_v63 = vld [vmem:[%s5678_s0] sm:$0xff] }
 0x2b5   :  { %v3858_v41 = vpack.c.bf16 %v595_v40, %v594_v38  ;;  %v598_v1 = vld [vmem:[%s5678_s0 + $0x8] sm:$0xff]  ;;  %v600_v5 = vld [vmem:[%s5678_s0 + $0x18] sm:$0xff]  ;;  %v1365_v7 = vld [vmem:[%s5679_s27] sm:$0xff] }
 0x2b6   :  { %3845 = vmatprep.subr.bf16.mxu1 %v3844_v21  ;;  %v3861_v3 = vpack.c.bf16 %v598_v1, %v597_v63  ;;  %v1374_v37 = vld [vmem:[#allocation20] sm:$0xff]  ;;  %v1375_v38 = vld [vmem:[#allocation20 + $0x8] sm:$0xff] }
 0x2b8   :  { %3847 = vmatpush3.bf16.msra.mxu1 %v3844_v21  ;;  %v1369_v21 = vld [vmem:[#allocation17] sm:$0xff] }
 0x2b9   :  { %3848 = vmatprep.subr.bf16.mxu1 %v4921_v35 }
 0x380   :  { %v742_v8 = vpop.f32.mrb[0].mxu1  ;;  %v672_v9 = vpop.f32.mrb[0].mxu0 }
 0x381   :  { %v3532_v11 = vpop.f32.mrb[1].mxu1  ;;  %3533 = vmatprep.subr.mxu0 %v742_v8  ;;  %v3527_v12 = vpop.f32.mrb[1].mxu0 }
 0x382   :  { %3534 = vmatpush3.msra.mxu0 %v742_v8  ;;  %v1366_v8 = vld [vmem:[%s5679_s27 + $0x8] sm:$0xff]  ;;  %v3321_v11 = vld [vmem:[#allocation14] ss:$0 sm:$0xff] }
 0x383   :  { %3536 = vmatmul.mubr.msk.f32.vlgmr.msra.gmra.mrb[2].mxu0 %vm602_vm1, %v5357_v10  ;;  %3541 = vmatprep.subr.mxu0 %v672_v9 }
 0x384   :  { %3542 = vmatpush3.msra.mxu0 %v672_v9  ;;  %3538 = vmatprep.mubr.msk.f32.mxu0 %vm602_vm1, %v5360_v13  ;;  %v3867_v9 = vpack.c.bf16 %v1366_v8, %v1365_v7 }
 0x385   :  { %3854 = vmatprep.subr.bf16.mxu0 %v4921_v35 }
 0x387   :  { %3539 = vmatmul.mubr.msk.f32.gmra.mrb[4].mxu0 %vm602_vm1, %v5367_v14 }
 0x388   :  { %3543 = vmatprep.mubr.msk.f32.mxu0 %vm602_vm1, %v5370_v15 }
 0x38b   :  { %3544 = vmatmul.mubr.msk.f32.vlgmr.msra.gmra.mrb[2].mxu0 %vm602_vm1, %v5377_v16 }
 0x38c   :  { %3546 = vmatprep.mubr.msk.f32.mxu0 %vm602_vm1, %v5380_v17  ;;  %3856 = vmatpush3.bf16.msra.mxu0 %v3855_v39  ;;  %v3878_v39 = vpack.c.bf16 %v1375_v38, %v1374_v37  ;;  %v2141_v37 = vld [vmem:[#allocation34 + $0x10] sm:$0xff] }
 0x38d   :  { %3857 = vmatprep.subr.bf16.mxu0 %v4921_v35 }
 0x38f   :  { %3547 = vmatmul.mubr.msk.f32.gmra.mrb[4].mxu0 %vm602_vm1, %v5387_v18 }
 0x390   :  { %3582 = vmatprep.mubr.msk.f32.mxu0 %vm4920_vm0, %v4919_v0  ;;  %3859 = vmatpush3.bf16.msra.mxu0 %v3858_v41 }
 0x391   :  { %3860 = vmatprep.subr.bf16.mxu0 %v4921_v35 }
 0x45e   :  { %v3545_v23 = vpop.f32.mrb[2].mxu0 }
 0x45f   :  { %v947_v24 = vadd.f32 %v3545_v23, %v3312_v22  ;;  %v921_v25 = vpop.f32.mrb[3].mxu0 }
 0x460   :  { %v946_v26 = vadd.f32 %v3312_v22, %v921_v25 }
 0x461   :  { %v951_v29 = vmax.f32 %v947_v24, 0.0 }
 0x462   :  { %v950_v27 = vmax.f32 %v946_v26, 0.0  ;;  %v3548_v28 = vpop.f32.mrb[4].mxu0  ;;  %v1367_v26 = vld [vmem:[%s5679_s27 + $0x10] sm:$0xff] }
 0x463   :  { %v949_v30 = vadd.f32 %v3548_v28, %v3312_v22  ;;  %v931_v31 = vpop.f32.mrb[5].mxu0  ;;  %v1371_v28 = vld [vmem:[#allocation17 + $0x10] sm:$0xff] }
 0x464   :  { %v948_v32 = vadd.f32 %v3312_v22, %v931_v31  ;;  %3557 = vmatprep.mubr.msk.f32.mxu1 %vm960_vm2, %v950_v27  ;;  %v1370_v22 = vld [vmem:[#allocation17 + $0x8] sm:$0xff]  ;;  %v1368_v27 = vld [vmem:[%s5679_s27 + $0x18] sm:$0xff] }
 0x465   :  { %3558 = vmatmul.mubr.msk.f32.vlgmr.msra.gmra.mrb[2].mxu1 %vm960_vm2, %v951_v29  ;;  %v953_v34 = vmax.f32 %v949_v30, 0.0  ;;  %v3873_v24 = vpack.c.bf16 %v1370_v22, %v1369_v21  ;;  %v3870_v29 = vpack.c.bf16 %v1368_v27, %v1367_v26  ;;  %v1372_v30 = vld [vmem:[#allocation17 + $0x18] sm:$0xff] }
 0x466   :  { %v952_v33 = vmax.f32 %v948_v32, 0.0  ;;  %v3876_v31 = vpack.c.bf16 %v1372_v30, %v1371_v28  ;;  %v3322_v32 = vld [vmem:[#allocation16] ss:$0 sm:$0xff]  ;;  %v1381_v22 = vld [vmem:[#allocation23 + $0x10] sm:$0xff]  ;;  %v1388_v28 = vld [vmem:[%s5680_s25] sm:$0xff] }
 0x468   :  { %3560 = vmatprep.mubr.msk.f32.mxu1 %vm960_vm2, %v952_v33 }
 0x469   :  { %3561 = vmatmul.mubr.msk.f32.gmra.mrb[4].mxu1 %vm960_vm2, %v953_v34 }
 0x46a   :  { %3571 = vmatprep.mubr.msk.f32.mxu1 %vm4920_vm0, %v4919_v0 }
 0x538   :  { %v3559_v43 = vpop.f32.mrb[2].mxu1 }
 0x539   :  { %v1045_v44 = vadd.f32 %v3559_v43, %v3313_v42  ;;  %v1039_v45 = vpop.f32.mrb[3].mxu1 }
 0x53a   :  { %v1040_v46 = vadd.f32 %v3313_v42, %v1039_v45 }
 0x53b   :  { %v1059_v47 = vmax.f32 %v1045_v44, 0.0 }
 0x53c   :  { %v1058_v48 = vmax.f32 %v1040_v46, 0.0  ;;  %v3562_v49 = vpop.f32.mrb[4].mxu1 }
 0x53d   :  { %v1055_v50 = vadd.f32 %v3562_v49, %v3313_v42  ;;  %v1049_v51 = vpop.f32.mrb[5].mxu1 }
 0x53e   :  { %v3849_v52 = vpack.c.bf16 %v1059_v47, %v1058_v48  ;;  %v1050_v53 = vadd.f32 %v3313_v42, %v1049_v51 }
 0x53f   :  { %v1061_v54 = vmax.f32 %v1055_v50, 0.0 }
 0x540   :  { %v1060_v55 = vmax.f32 %v1050_v53, 0.0  ;;  %3850 = vmatpush3.bf16.msra.mxu1 %v3849_v52  ;;  %v1383_v52 = vld [vmem:[#allocation25] sm:$0xff]  ;;  %v1384_v53 = vld [vmem:[#allocation25 + $0x8] sm:$0xff] }
 0x541   :  { %3851 = vmatprep.subr.bf16.mxu1 %v4921_v35 }
 0x542   :  { %v3852_v56 = vpack.c.bf16 %v1061_v54, %v1060_v55  ;;  %v1385_v54 = vld [vmem:[#allocation25 + $0x10] sm:$0xff]  ;;  %v3893_v55 = vpack.c.bf16 %v1384_v53, %v1383_v52  ;;  %v2130_v53 = vld [vmem:[#allocation29 + $0x18] sm:$0xff] }
 0x543   :  { %v2129_v52 = vld [vmem:[#allocation29 + $0x10] sm:$0xff] }
 0x544   :  { %3853 = vmatpush3.bf16.msra.mxu1 %v3852_v56  ;;  %v1386_v56 = vld [vmem:[#allocation25 + $0x18] sm:$0xff] }
 0x545   :  { %3585 = vmatprep.subr.mxu1 %v4919_v0 }
 0x547   :  { %3572 = vmatmul.mubr.msk.f32.vlgmr.msra.gmra.mrb[6].mxu1 %vm960_vm2, %v5411_v57 }
 0x548   :  { %3586 = vmatpush3.msra.mxu1 %v591_v58  ;;  %3587 = vmatprep.mubr.msk.f32.mxu1 %vm4920_vm0, %v4919_v0  ;;  %v3896_v58 = vpack.c.bf16 %v1386_v56, %v1385_v54  ;;  %v3920_v54 = vpack.c.bf16 %v2130_v53, %v2129_v52  ;;  %v2138_v56 = vld [vmem:[#allocation32 + $0x18] sm:$0xff] }
 0x549   :  { %3866 = vmatprep.subr.bf16.mxu1 %v4921_v35 }
 0x54b   :  { %3588 = vmatmul.mubr.msk.f32.vlgmr.msra.gmra.mrb[8].mxu1 %vm602_vm1, %v5343_v2  ;;  %v599_v2 = vld [vmem:[%s5678_s0 + $0x10] sm:$0xff] }
 0x54c   :  { %3609 = vmatprep.mubr.msk.f32.mxu1 %vm4920_vm0, %v4919_v0  ;;  %v3864_v6 = vpack.c.bf16 %v600_v5, %v599_v2  ;;  %3868 = vmatpush3.bf16.msra.mxu1 %v3867_v9 }
 0x54d   :  { %3869 = vmatprep.subr.bf16.mxu1 %v4921_v35 }
 0x550   :  { %3871 = vmatpush3.bf16.msra.mxu1 %v3870_v29  ;;  %v1389_v29 = vld [vmem:[%s5680_s25 + $0x8] sm:$0xff] }
 0x551   :  { %v3905_v30 = vpack.c.bf16 %v1389_v29, %v1388_v28  ;;  %v2171_v29 = vld [vmem:[%s5682_s22] sm:$0xff] }
 0x61a   :  { %v1131_v59 = vpop.f32.mrb[6].mxu1 }
 0x61b   :  { %v3573_v60 = vpop.f32.mrb[7].mxu1  ;;  %3583 = vmatmul.mubr.msk.f32.vlgmr.msra.gmra.mrb[6].mxu0 %vm960_vm2, %v1131_v59  ;;  %v3335_v59 = vld [vmem:[#allocation22] ss:$0 sm:$0xff] }
 0x61c   :  { %3598 = vmatprep.mubr.msk.f32.mxu0 %vm4920_vm0, %v4919_v0  ;;  %3862 = vmatpush3.bf16.msra.mxu0 %v3861_v3 }
 0x61d   :  { %3863 = vmatprep.subr.bf16.mxu0 %v4921_v35 }
 0x61e   :  { %v1274_v61 = vpop.f32.mrb[8].mxu1 }
 0x61f   :  { %v3589_v62 = vpop.f32.mrb[9].mxu1 }
 0x620   :  { %3865 = vmatpush3.bf16.msra.mxu0 %v3864_v6 }
 0x621   :  { %3872 = vmatprep.subr.bf16.mxu0 %v4921_v35 }
 0x6ee   :  { %v1204_v12 = vpop.f32.mrb[6].mxu0 }
 0x6ef   :  { %v1275_v19 = vadd.f32 %v1274_v61, %v1204_v12  ;;  %v3584_v20 = vpop.f32.mrb[7].mxu0  ;;  %v1379_v12 = vld [vmem:[#allocation23] sm:$0xff] }
 0x6f1   :  { %v1284_v23 = vadd.f32 %v3321_v11, %v1275_v19  ;;  %v1380_v19 = vld [vmem:[#allocation23 + $0x8] sm:$0xff] }
 0x6f2   :  { %v3899_v21 = vpack.c.bf16 %v1380_v19, %v1379_v12  ;;  %v2147_v12 = vld [vmem:[%s5681_s6] sm:$0xff]  ;;  %v2148_v19 = vld [vmem:[%s5681_s6 + $0x8] sm:$0xff] }
 0x6f3   :  { %v1285_v25 = vmax.f32 %v1284_v23, 0.0  ;;  %v1382_v23 = vld [vmem:[#allocation23 + $0x18] sm:$0xff] }
 0x6f5   :  { %3599 = vmatmul.mubr.msk.f32.vlgmr.msra.gmra.mrb[8].mxu0 %vm960_vm2, %v1285_v25 }
 0x6f6   :  { %3874 = vmatpush3.bf16.msra.mxu0 %v3873_v24  ;;  %3620 = vmatprep.mubr.msk.f32.mxu0 %vm4920_vm0, %v4919_v0  ;;  %v3902_v24 = vpack.c.bf16 %v1382_v23, %v1381_v22  ;;  %v2150_v22 = vld [vmem:[%s5681_s6 + $0x18] sm:$0xff] }
 0x6f7   :  { %3875 = vmatprep.subr.bf16.mxu0 %v4921_v35 }
 0x6fa   :  { %3877 = vmatpush3.bf16.msra.mxu0 %v3876_v31  ;;  %v1390_v31 = vld [vmem:[%s5680_s25 + $0x10] sm:$0xff] }
 0x6fb   :  { %3879 = vmatprep.subr.bf16.mxu0 %v3878_v39 }
 0x7c8   :  { %v1361_v33 = vpop.f32.mrb[8].mxu0 }
 0x7c9   :  { %v5441_v34 = vadd.f32 %v3322_v32, %v1361_v33  ;;  %v3600_v36 = vpop.f32.mrb[9].mxu0  ;;  %v1391_v32 = vld [vmem:[%s5680_s25 + $0x18] sm:$0xff] }
 0x7ca   :  { %v3908_v33 = vpack.c.bf16 %v1391_v32, %v1390_v31  ;;  %v2140_v36 = vld [vmem:[#allocation34 + $0x8] sm:$0xff] }
 0x7cb   :  { %3610 = vmatmul.mubr.msk.f32.vlgmr.msra.gmra.mrb[10].mxu1 %vm960_vm2, %v5441_v34  ;;  %3621 = vmatmul.mubr.msk.f32.vlgmr.msra.gmra.mrb[10].mxu0 %vm960_vm2, %v5441_v34  ;;  %v5546_v32 = vld [vmem:[#allocation5 + $0x8] sm:$0xff] }
 0x7cc   :  { %3625 = vmatprep.mubr.msk.f32.mxu1 %vm602_vm1, %v5350_v4  ;;  %3881 = vmatpush3.bf16.msra.mxu0 %v3878_v39  ;;  %v1376_v4 = vld [vmem:[#allocation20 + $0x10] sm:$0xff]  ;;  %v2142_v39 = vld [vmem:[#allocation34 + $0x18] sm:$0xff] }
 0x89e   :  { %v1462_v40 = vpop.f32.mrb[10].mxu1  ;;  %v1532_v41 = vpop.f32.mrb[10].mxu0 }
 0x89f   :  { %v3611_v42 = vpop.f32.mrb[11].mxu1  ;;  %v3622_v43 = vpop.f32.mrb[11].mxu0  ;;  %3623 = vmatprep.subr.mxu1 %v1532_v41 }
 0x8a0   :  { %3624 = vmatpush3.msra.mxu1 %v1532_v41  ;;  %v2143_v41 = vld [vmem:[#allocation35] sm:$0xff]  ;;  %v2144_v42 = vld [vmem:[#allocation35 + $0x8] sm:$0xff] }
 0x8a1   :  { %3626 = vmatmul.mubr.msk.f32.vlgmr.msra.gmra.mrb[12].mxu1 %vm602_vm1, %v5357_v10  ;;  %3631 = vmatprep.subr.mxu1 %v1462_v40  ;;  %v1377_v10 = vld [vmem:[#allocation20 + $0x18] sm:$0xff]  ;;  %v5497_v43 = vld [vmem:[#allocation5] sm:$0xff] }
 0x8a2   :  { %3632 = vmatpush3.msra.mxu1 %v1462_v40  ;;  %3628 = vmatprep.mubr.msk.f32.mxu1 %vm602_vm1, %v5360_v13  ;;  %v3882_v13 = vpack.c.bf16 %v1377_v10, %v1376_v4  ;;  %v3914_v40 = vpack.c.bf16 %v2142_v39, %v2141_v37  ;;  %v3923_v4 = vpack.c.bf16 %v2144_v42, %v2143_v41  ;;  %v2145_v10 = vld [vmem:[#allocation35 + $0x10] sm:$0xff]  ;;  %v2158_v41 = vld [vmem:[#allocation40 + $0x18] sm:$0xff]  ;;  %v2163_v42 = vld [vmem:[#allocation43] sm:$0xff] }
 0x8a3   :  { %3886 = vmatprep.subr.bf16.mxu1 %v4921_v35  ;;  %v2156_v37 = vld [vmem:[#allocation40 + $0x8] sm:$0xff] }
 0x8a4   :  { %3883 = vmatprep.subr.bf16.mxu0 %v3882_v13 }
 0x8a5   :  { %3629 = vmatmul.mubr.msk.f32.gmra.mrb[14].mxu1 %vm602_vm1, %v5367_v14  ;;  %3885 = vmatpush3.bf16.msra.mxu0 %v3882_v13  ;;  %v3334_v14 = vld [vmem:[#allocation19] ss:$0 sm:$0xff] }
 0x8a6   :  { %3633 = vmatprep.mubr.msk.f32.mxu1 %vm602_vm1, %v5370_v15  ;;  %3892 = vmatprep.subr.bf16.mxu0 %v4921_v35  ;;  %v2146_v13 = vld [vmem:[#allocation35 + $0x18] sm:$0xff] }
 0x8a9   :  { %3634 = vmatmul.mubr.msk.f32.vlgmr.msra.gmra.mrb[12].mxu1 %vm602_vm1, %v5377_v16 }
 0x8aa   :  { %3636 = vmatprep.mubr.msk.f32.mxu1 %vm602_vm1, %v5380_v17 }
 0x8ad   :  { %3637 = vmatmul.mubr.msk.f32.gmra.mrb[14].mxu1 %vm602_vm1, %v5387_v18 }
 0x8ae   :  { %3661 = vmatprep.mubr.msk.f32.mxu1 %vm4920_vm0, %v4919_v0 }
 0x97c   :  { %v3635_v15 = vpop.f32.mrb[12].mxu1 }
 0x97d   :  { %v1713_v44 = vadd.f32 %v3635_v15, %v3334_v14  ;;  %v1687_v16 = vpop.f32.mrb[13].mxu1  ;;  %v2135_v15 = vld [vmem:[#allocation32] sm:$0xff] }
 0x97e   :  { %v1712_v45 = vadd.f32 %v3334_v14, %v1687_v16 }
 0x97f   :  { %v1717_v47 = vmax.f32 %v1713_v44, 0.0  ;;  %v2136_v44 = vld [vmem:[#allocation32 + $0x8] sm:$0xff] }
 0x980   :  { %v1716_v46 = vmax.f32 %v1712_v45, 0.0  ;;  %v3638_v17 = vpop.f32.mrb[14].mxu1  ;;  %v3935_v16 = vpack.c.bf16 %v2136_v44, %v2135_v15  ;;  %v3343_v45 = vld [vmem:[#allocation26] ss:$0 sm:$0xff] }
 0x981   :  { %v1715_v48 = vadd.f32 %v3638_v17, %v3334_v14  ;;  %v1697_v18 = vpop.f32.mrb[15].mxu1  ;;  %v2166_v15 = vld [vmem:[#allocation43 + $0x18] sm:$0xff] }
 0x982   :  { %v1714_v49 = vadd.f32 %v3334_v14, %v1697_v18  ;;  %3647 = vmatprep.mubr.msk.f32.mxu0 %vm960_vm2, %v1716_v46  ;;  %v3926_v14 = vpack.c.bf16 %v2146_v13, %v2145_v10  ;;  %v2128_v18 = vld [vmem:[#allocation29 + $0x8] sm:$0xff] }
 0x983   :  { %3648 = vmatmul.mubr.msk.f32.vlgmr.msra.gmra.mrb[12].mxu0 %vm960_vm2, %v1717_v47  ;;  %v1719_v51 = vmax.f32 %v1715_v48, 0.0  ;;  %v2127_v48 = vld [vmem:[#allocation29] sm:$0xff] }
 0x984   :  { %v1718_v50 = vmax.f32 %v1714_v49, 0.0  ;;  %3894 = vmatpush3.bf16.msra.mxu0 %v3893_v55  ;;  %v2137_v55 = vld [vmem:[#allocation32 + $0x10] sm:$0xff] }
 0x985   :  { %3895 = vmatprep.subr.bf16.mxu0 %v4921_v35 }
 0x986   :  { %3650 = vmatprep.mubr.msk.f32.mxu0 %vm960_vm2, %v1718_v50  ;;  %v3917_v50 = vpack.c.bf16 %v2128_v18, %v2127_v48 }
 0x987   :  { %3651 = vmatmul.mubr.msk.f32.gmra.mrb[14].mxu0 %vm960_vm2, %v1719_v51 }
 0x988   :  { %3672 = vmatprep.mubr.msk.f32.mxu0 %vm4920_vm0, %v4919_v0  ;;  %3897 = vmatpush3.bf16.msra.mxu0 %v3896_v58  ;;  %v3938_v58 = vpack.c.bf16 %v2138_v56, %v2137_v55 }
 0x989   :  { %3904 = vmatprep.subr.bf16.mxu0 %v4921_v35 }
 0xa56   :  { %v3649_v60 = vpop.f32.mrb[12].mxu0 }
 0xa57   :  { %v1810_v61 = vadd.f32 %v3649_v60, %v3335_v59  ;;  %v1804_v62 = vpop.f32.mrb[13].mxu0 }
 0xa58   :  { %v1805_v63 = vadd.f32 %v3335_v59, %v1804_v62 }
 0xa59   :  { %v1824_v1 = vmax.f32 %v1810_v61, 0.0 }
 0xa5a   :  { %v1823_v3 = vmax.f32 %v1805_v63, 0.0  ;;  %v3652_v2 = vpop.f32.mrb[14].mxu0  ;;  %v2131_v63 = vld [vmem:[#allocation31] sm:$0xff] }
 0xa5b   :  { %v1820_v5 = vadd.f32 %v3652_v2, %v3335_v59  ;;  %v1814_v6 = vpop.f32.mrb[15].mxu0 }
 0xa5c   :  { %v3887_v7 = vpack.c.bf16 %v1824_v1, %v1823_v3  ;;  %v1815_v8 = vadd.f32 %v3335_v59, %v1814_v6  ;;  %v2132_v1 = vld [vmem:[#allocation31 + $0x8] sm:$0xff]  ;;  %v3344_v3 = vld [vmem:[#allocation28] ss:$0 sm:$0xff] }
 0xa5d   :  { %v1826_v9 = vmax.f32 %v1820_v5, 0.0  ;;  %v3929_v5 = vpack.c.bf16 %v2132_v1, %v2131_v63  ;;  %v3356_v63 = vld [vmem:[#allocation38] ss:$0 sm:$0xff] }
 0xa5e   :  { %v1825_v11 = vmax.f32 %v1815_v8, 0.0  ;;  %3888 = vmatpush3.bf16.msra.mxu1 %v3887_v7  ;;  %v2133_v8 = vld [vmem:[#allocation31 + $0x10] sm:$0xff] }
 0xa5f   :  { %3889 = vmatprep.subr.bf16.mxu1 %v4921_v35 }
 0xa60   :  { %v3890_v20 = vpack.c.bf16 %v1826_v9, %v1825_v11  ;;  %v2134_v9 = vld [vmem:[#allocation31 + $0x18] sm:$0xff] }
 0xa61   :  { %v3932_v11 = vpack.c.bf16 %v2134_v9, %v2133_v8 }
 0xa62   :  { %3891 = vmatpush3.bf16.msra.mxu1 %v3890_v20  ;;  %v3941_v20 = vpack.c.bf16 %v2148_v19, %v2147_v12  ;;  %v2160_v12 = vld [vmem:[#allocation41 + $0x8] sm:$0xff] }
 0xa63   :  { %3898 = vmatprep.subr.bf16.mxu1 %v4921_v35 }
 0xa65   :  { %3662 = vmatmul.mubr.msk.f32.vlgmr.msra.gmra.mrb[16].mxu1 %vm960_vm2, %v5411_v57 }
 0xa66   :  { %3900 = vmatpush3.bf16.msra.mxu1 %v3899_v21  ;;  %3683 = vmatprep.mubr.msk.f32.mxu1 %vm4920_vm0, %v4919_v0  ;;  %v2149_v21 = vld [vmem:[%s5681_s6 + $0x10] sm:$0xff] }
 0xa67   :  { %3901 = vmatprep.subr.bf16.mxu1 %v4921_v35  ;;  %v3944_v23 = vpack.c.bf16 %v2150_v22, %v2149_v21 }
 0xa6a   :  { %3903 = vmatpush3.bf16.msra.mxu1 %v3902_v24  ;;  %v2167_v24 = vld [vmem:[#allocation44] sm:$0xff] }
 0xa6b   :  { %3910 = vmatprep.subr.bf16.mxu1 %v4921_v35 }
 0xa6d   :  { %3684 = vmatmul.mubr.msk.f32.vlgmr.msra.gmra.mrb[18].mxu1 %vm960_vm2, %v5441_v34  ;;  %v2139_v34 = vld [vmem:[#allocation34] sm:$0xff] }
 0xa6e   :  { %3705 = vmatprep.mubr.msk.f32.mxu1 %vm4920_vm0, %v4919_v0  ;;  %v3911_v38 = vpack.c.bf16 %v2140_v36, %v2139_v34  ;;  %v2174_v34 = vld [vmem:[%s5682_s22 + $0x18] sm:$0xff]  ;;  %v2155_v36 = vld [vmem:[#allocation40] sm:$0xff] }
 0xa6f   :  { %v3953_v39 = vpack.c.bf16 %v2156_v37, %v2155_v36  ;;  %v3131_v37 = vld [vmem:[#allocation47] sm:$0xff] }
 0xa70   :  { %3912 = vmatpush3.bf16.msra.mxu1 %v3911_v38 }
 0xa71   :  { %3913 = vmatprep.subr.bf16.mxu1 %v4921_v35 }
 0xa74   :  { %3915 = vmatpush3.bf16.msra.mxu1 %v3914_v40  ;;  %v2157_v40 = vld [vmem:[#allocation40 + $0x10] sm:$0xff] }
 0xa75   :  { %3922 = vmatprep.subr.bf16.mxu1 %v4921_v35  ;;  %v3956_v10 = vpack.c.bf16 %v2158_v41, %v2157_v40  ;;  %v3134_v41 = vld [vmem:[#allocation47 + $0x18] sm:$0xff] }
 0xa77   :  { %3706 = vmatmul.mubr.msk.f32.vlgmr.msra.gmra.mrb[20].mxu1 %vm960_vm2, %v5497_v43 }
 0xa78   :  { %3924 = vmatpush3.bf16.msra.mxu1 %v3923_v4  ;;  %3727 = vmatprep.mubr.msk.f32.mxu1 %vm4920_vm0, %v4919_v0  ;;  %v2164_v4 = vld [vmem:[#allocation43 + $0x8] sm:$0xff] }
 0xa79   :  { %3925 = vmatprep.subr.bf16.mxu1 %v4921_v35  ;;  %v3971_v13 = vpack.c.bf16 %v2164_v4, %v2163_v42 }
 0xa7c   :  { %3927 = vmatpush3.bf16.msra.mxu1 %v3926_v14  ;;  %v2165_v14 = vld [vmem:[#allocation43 + $0x10] sm:$0xff] }
 0xa7d   :  { %3934 = vmatprep.subr.bf16.mxu1 %v4921_v35  ;;  %v3974_v44 = vpack.c.bf16 %v2166_v15, %v2165_v14 }
 0xa7f   :  { %3728 = vmatmul.mubr.msk.f32.vlgmr.msra.gmra.mrb[22].mxu1 %vm960_vm2, %v5497_v43 }
 0xa80   :  { %3936 = vmatpush3.bf16.msra.mxu1 %v3935_v16  ;;  %3749 = vmatprep.mubr.msk.f32.mxu1 %vm4920_vm0, %v4919_v0  ;;  %v3348_v16 = vld [vmem:[%s5683_s23] ss:$0 sm:$0xff] }
 0xa81   :  { %3937 = vmatprep.subr.bf16.mxu1 %v4921_v35 }
 0xa84   :  { %3939 = vmatpush3.bf16.msra.mxu1 %v3938_v58 }
 0xa85   :  { %3946 = vmatprep.subr.bf16.mxu1 %v4921_v35 }
 0xb38   :  { %v1893_v57 = vpop.f32.mrb[16].mxu1 }
 0xb39   :  { %3673 = vmatmul.mubr.msk.f32.vlgmr.msra.gmra.mrb[16].mxu0 %vm960_vm2, %v1893_v57  ;;  %v3663_v25 = vpop.f32.mrb[17].mxu1  ;;  %v2168_v57 = vld [vmem:[#allocation44 + $0x8] sm:$0xff] }
 0xb3a   :  { %3694 = vmatprep.mubr.msk.f32.mxu0 %vm4920_vm0, %v4919_v0  ;;  %3906 = vmatpush3.bf16.msra.mxu0 %v3905_v30  ;;  %v3947_v25 = vpack.c.bf16 %v2168_v57, %v2167_v24  ;;  %v2172_v30 = vld [vmem:[%s5682_s22 + $0x8] sm:$0xff]  ;;  %v2161_v24 = vld [vmem:[#allocation41 + $0x10] sm:$0xff] }
 0xb3b   :  { %3907 = vmatprep.subr.bf16.mxu0 %v4921_v35  ;;  %v3959_v31 = vpack.c.bf16 %v2172_v30, %v2171_v29  ;;  %v2162_v57 = vld [vmem:[#allocation41 + $0x18] sm:$0xff] }
 0xb3c   :  { %v2178_v29 = vld [vmem:[#allocation46 + $0x18] sm:$0xff] }
 0xb3e   :  { %3909 = vmatpush3.bf16.msra.mxu0 %v3908_v33  ;;  %v2173_v33 = vld [vmem:[%s5682_s22 + $0x10] sm:$0xff] }
 0xb3f   :  { %3916 = vmatprep.subr.bf16.mxu0 %v4921_v35  ;;  %v3962_v38 = vpack.c.bf16 %v2174_v34, %v2173_v33 }
 0xb40   :  { %v2036_v26 = vpop.f32.mrb[18].mxu1 }
 0xb41   :  { %v3685_v27 = vpop.f32.mrb[19].mxu1 }
 0xb42   :  { %v2170_v27 = vld [vmem:[#allocation44 + $0x18] sm:$0xff] }
 0xb4a   :  { %v5517_v59 = vpop.f32.mrb[20].mxu1 }
 0xb4b   :  { %v3707_v60 = vpop.f32.mrb[21].mxu1 }
 0xb52   :  { %v5519_v61 = vpop.f32.mrb[22].mxu1 }
 0xb53   :  { %v3729_v62 = vpop.f32.mrb[23].mxu1 }
 0xc0c   :  { %v1966_v46 = vpop.f32.mrb[16].mxu0 }
 0xc0d   :  { %v2037_v17 = vadd.f32 %v2036_v26, %v1966_v46  ;;  %v3674_v47 = vpop.f32.mrb[17].mxu0  ;;  %v2169_v26 = vld [vmem:[#allocation44 + $0x10] sm:$0xff] }
 0xc0e   :  { %v3950_v28 = vpack.c.bf16 %v2170_v27, %v2169_v26  ;;  %v2175_v26 = vld [vmem:[#allocation46] sm:$0xff]  ;;  %v2176_v27 = vld [vmem:[#allocation46 + $0x8] sm:$0xff] }
 0xc0f   :  { %v2046_v49 = vadd.f32 %v3343_v45, %v2037_v17 }
 0xc11   :  { %v2047_v51 = vmax.f32 %v2046_v49, 0.0 }
 0xc13   :  { %3695 = vmatmul.mubr.msk.f32.vlgmr.msra.gmra.mrb[18].mxu0 %vm960_vm2, %v2047_v51 }
 0xc14   :  { %3918 = vmatpush3.bf16.msra.mxu0 %v3917_v50  ;;  %3716 = vmatprep.mubr.msk.f32.mxu0 %vm4920_vm0, %v4919_v0  ;;  %v3352_v50 = vld [vmem:[%s5684_s4] ss:$0 sm:$0xff] }
 0xc15   :  { %3919 = vmatprep.subr.bf16.mxu0 %v4921_v35 }
 0xc18   :  { %3921 = vmatpush3.bf16.msra.mxu0 %v3920_v54 }
 0xc19   :  { %3928 = vmatprep.subr.bf16.mxu0 %v4921_v35 }
 0xce6   :  { %v2123_v2 = vpop.f32.mrb[18].mxu0 }
 0xce7   :  { %v2124_v6 = vadd.f32 %v3344_v3, %v2123_v2  ;;  %v3696_v7 = vpop.f32.mrb[19].mxu0  ;;  %v3354_v2 = vld [vmem:[#allocation37] ss:$0 sm:$0xff] }
 0xce9   :  { %3717 = vmatmul.mubr.msk.f32.vlgmr.msra.gmra.mrb[20].mxu0 %vm960_vm2, %v2124_v6  ;;  %3750 = vmatmul.mubr.msk.f32.vlgmr.msra.gmra.mrb[24].mxu1 %vm960_vm2, %v2124_v6 }
 0xcea   :  { %3930 = vmatpush3.bf16.msra.mxu0 %v3929_v5  ;;  %3738 = vmatprep.mubr.msk.f32.mxu0 %vm4920_vm0, %v4919_v0 }
 0xceb   :  { %3931 = vmatprep.subr.bf16.mxu0 %v4921_v35  ;;  %3771 = vmatprep.mubr.msk.f32.mxu1 %vm4920_vm0, %v4919_v0 }
 0xcec   :  { %3948 = vmatpush3.bf16.msra.mxu1 %v3947_v25  ;;  %v3968_v25 = vpack.c.bf16 %v2162_v57, %v2161_v24 }
 0xced   :  { %3949 = vmatprep.subr.bf16.mxu1 %v4921_v35 }
 0xcee   :  { %3933 = vmatpush3.bf16.msra.mxu0 %v3932_v11  ;;  %v2159_v11 = vld [vmem:[#allocation41] sm:$0xff] }
 0xcef   :  { %3940 = vmatprep.subr.bf16.mxu0 %v4921_v35  ;;  %v3965_v22 = vpack.c.bf16 %v2160_v12, %v2159_v11 }
 0xcf0   :  { %3951 = vmatpush3.bf16.msra.mxu1 %v3950_v28  ;;  %v2177_v28 = vld [vmem:[#allocation46 + $0x10] sm:$0xff] }
 0xcf1   :  { %3739 = vmatmul.mubr.msk.f32.vlgmr.msra.gmra.mrb[22].mxu0 %vm960_vm2, %v2124_v6  ;;  %3958 = vmatprep.subr.bf16.mxu1 %v4921_v35  ;;  %v3980_v30 = vpack.c.bf16 %v2178_v29, %v2177_v28 }
 0xcf2   :  { %3942 = vmatpush3.bf16.msra.mxu0 %v3941_v20  ;;  %3760 = vmatprep.mubr.msk.f32.mxu0 %vm4920_vm0, %v4919_v0 }
 0xcf3   :  { %3943 = vmatprep.subr.bf16.mxu0 %v4921_v35  ;;  %3772 = vmatmul.mubr.msk.f32.vlgmr.msra.gmra.mrb[26].mxu1 %vm960_vm2, %v5546_v32 }
 0xcf4   :  { %3960 = vmatpush3.bf16.msra.mxu1 %v3959_v31  ;;  %3793 = vmatprep.mubr.msk.f32.mxu1 %vm4920_vm0, %v4919_v0 }
 0xcf5   :  { %3961 = vmatprep.subr.bf16.mxu1 %v4921_v35 }
 0xcf6   :  { %3945 = vmatpush3.bf16.msra.mxu0 %v3944_v23 }
 0xcf7   :  { %3952 = vmatprep.subr.bf16.mxu0 %v4921_v35 }
 0xcf8   :  { %3963 = vmatpush3.bf16.msra.mxu1 %v3962_v38  ;;  %v3132_v38 = vld [vmem:[#allocation47 + $0x8] sm:$0xff] }
 0xcf9   :  { %3761 = vmatmul.mubr.msk.f32.vlgmr.msra.gmra.mrb[24].mxu0 %vm960_vm2, %v5497_v43  ;;  %3970 = vmatprep.subr.bf16.mxu1 %v4921_v35  ;;  %v3983_v40 = vpack.c.bf16 %v3132_v38, %v3131_v37 }
 0xcfa   :  { %3782 = vmatprep.mubr.msk.f32.mxu0 %vm4920_vm0, %v4919_v0  ;;  %3954 = vmatpush3.bf16.msra.mxu0 %v3953_v39  ;;  %v3133_v39 = vld [vmem:[#allocation47 + $0x10] sm:$0xff] }
 0xcfb   :  { %3955 = vmatprep.subr.bf16.mxu0 %v4921_v35  ;;  %3794 = vmatmul.mubr.msk.f32.vlgmr.msra.gmra.mrb[28].mxu1 %vm960_vm2, %v5546_v32  ;;  %v3986_v42 = vpack.c.bf16 %v3134_v41, %v3133_v39 }
 0xcfc   :  { %3972 = vmatpush3.bf16.msra.mxu1 %v3971_v13  ;;  %3815 = vmatprep.mubr.msk.f32.mxu1 %vm4920_vm0, %v4919_v0 }
 0xcfd   :  { %3973 = vmatprep.subr.bf16.mxu1 %v4921_v35 }
 0xcfe   :  { %3957 = vmatpush3.bf16.msra.mxu0 %v3956_v10 }
 0xcff   :  { %3964 = vmatprep.subr.bf16.mxu0 %v4921_v35 }
 0xd00   :  { %3975 = vmatpush3.bf16.msra.mxu1 %v3974_v44 }
 0xd01   :  { %3982 = vmatprep.subr.bf16.mxu1 %v4921_v35 }
 0xdbc   :  { %v2326_v45 = vpop.f32.mrb[20].mxu0  ;;  %v2568_v46 = vpop.f32.mrb[24].mxu1 }
 0xdbd   :  { %v2327_v17 = vadd.f32 %v2326_v45, %v5517_v59  ;;  %v3718_v47 = vpop.f32.mrb[21].mxu0  ;;  %v3751_v48 = vpop.f32.mrb[25].mxu1  ;;  %v2569_v6 = vadd.f32 %v3354_v2, %v2568_v46  ;;  %v3364_v45 = vld [vmem:[%s5686_s20] ss:$0 sm:$0xff] }
 0xdbf   :  { %v2336_v18 = vadd.f32 %v3348_v16, %v2327_v17 }
 0xdc1   :  { %v3349_v49 = vmul.f32 -1.442695, %v2336_v18 }
 0xdc3   :  { %4080 = vpow2.f32 %v3349_v49 }
 0xdc4   :  { %v2479_v51 = vpop.f32.mrb[22].mxu0 }
 0xdc5   :  { %v2480_v52 = vadd.f32 %v2479_v51, %v5519_v61  ;;  %v3740_v53 = vpop.f32.mrb[23].mxu0 }
 0xdc6   :  { %v2726_v31 = vpop.f32.mrb[26].mxu1 }
 0xdc7   :  { %v2489_v54 = vadd.f32 %v3352_v50, %v2480_v52  ;;  %v3773_v33 = vpop.f32.mrb[27].mxu1  ;;  %v3368_v52 = vld [vmem:[%s5152_s21] ss:$0 sm:$0xff]  ;;  %s4922_s21 = smov [#allocation50]  }
 0xdc8   :  { %s3224_s7 = sshll.u32 %s4922_s21, 4  ;;  %s3225_s7 = int_to_ptr.vmem [resolvable:$true] %s3224_s7 }
 0xdc9   :  { %v3353_v55 = vmul.f32 -1.442695, %v2489_v54  ;;  %s4760_s10 = scalar_lea.vmem %s3225_s7, 256  ;;  %p4765_p3 = scmp.lt.s32.totalorder %s3225_s7, %s3225_s7 }
 0xdca   :  { %p4761_p2 = scmp.ne.s32.totalorder %s3225_s7, %s4760_s10  ;;  %p4766_p4 = scmp.lt.s32.totalorder %s4760_s10, %s4760_s10 }
 0xdcb   :  { %4082 = vpow2.f32 %v3353_v55 }
 0xdcc   :  { %v2644_v56 = vpop.f32.mrb[24].mxu0  ;;  %p4767_p5 = por %p4766_p4, %p4765_p3 }
 0xdcd   :  { %v4081_v58 = vpop.eup %4080  ;;  %v3762_v60 = vpop.f32.mrb[25].mxu0  ;;  %v2645_v3 = vadd.f32 %v3356_v63, %v2644_v56  ;;  %v3366_v56 = vld [vmem:[%s5687_s2] ss:$0 sm:$0xff] }
 0xdce   :  { %v2340_v62 = vadd.f32 1.0, %v4081_v58  ;;  %v2882_v34 = vpop.f32.mrb[28].mxu1  ;;  %p4768_p6 = pnand %p4767_p5, %p4761_p2 }
 0xdcf   :  { %v3795_v36 = vpop.f32.mrb[29].mxu1 }
 0xdd0   :  { %4084 = vrcp.f32 %v2340_v62 }
 0xdd5   :  { %v4083_v59 = vpop.eup %4082 }
 0xdd6   :  { %v2493_v1 = vadd.f32 1.0, %v4083_v59 }
 0xdd8   :  { %4086 = vrcp.f32 %v2493_v1 }
 0xdda   :  { %v4085_v5 = vpop.eup %4084 }
 0xddb   :  { %v2648_v7 = vmul.f32 %v4085_v5, %v2645_v3 }
 0xddd   :  { %v2649_v8 = vadd.f32 %v2648_v7, %v2569_v6 }
 0xddf   :  { %4088 = vtanh.f32 %v2649_v8 }
 0xde2   :  { %v4087_v61 = vpop.eup %4086 }
 0xde3   :  { %v2651_v9 = vsub.f32 1.0, %v4087_v61  ;;  %v2653_v21 = vmul.f32 %v4087_v61, %v5497_v43  ;;  %v3977_v43 = vpack.c.bf16 %v2176_v27, %v2175_v26 }
 0xde9   :  { %v4089_v19 = vpop.eup %4088 }
 0xdea   :  { %v2652_v20 = vmul.f32 %v4089_v19, %v2651_v9 }
 0xdec   :  { %v2654_v23 = vadd.f32 %v2653_v21, %v2652_v20 }
 0xdee   :  { %3783 = vmatmul.mubr.msk.f32.vlgmr.msra.gmra.mrb[26].mxu0 %vm960_vm2, %v2654_v23  ;;  %3128 = vst.msk [vmem:[#allocation50] sm:$0xff] %vm960_vm2, %v2654_v23  ;;  %3816 = vmatmul.mubr.msk.f32.vlgmr.msra.gmra.mrb[30].mxu1 %vm960_vm2, %v2654_v23 }
 0xdef   :  { %3966 = vmatpush3.bf16.msra.mxu0 %v3965_v22  ;;  %3804 = vmatprep.mubr.msk.f32.mxu0 %vm4920_vm0, %v4919_v0 }
 0xdf0   :  { %3967 = vmatprep.subr.bf16.mxu0 %v4921_v35  ;;  %3837 = vmatprep.mubr.msk.f32.mxu1 %vm4920_vm0, %v4919_v0 }
 0xdf1   :  { %3984 = vmatpush3.bf16.msra.mxu1 %v3983_v40 }
 0xdf2   :  { %3985 = vmatprep.subr.bf16.mxu1 %v4921_v35 }
 0xdf3   :  { %3969 = vmatpush3.bf16.msra.mxu0 %v3968_v25 }
 0xdf4   :  { %3976 = vmatprep.subr.bf16.mxu0 %v4921_v35 }
 0xdf5   :  { %3987 = vmatpush3.bf16.msra.mxu1 %v3986_v42 }
 0xdf6   :  { %3805 = vmatmul.mubr.msk.f32.vlgmr.msra.gmra.mrb[28].mxu0 %vm960_vm2, %v2654_v23 }
 0xdf7   :  { %3978 = vmatpush3.bf16.msra.mxu0 %v3977_v43  ;;  %3826 = vmatprep.mubr.msk.f32.mxu0 %vm4920_vm0, %v4919_v0  ;;  %v3360_v0 = vld [vmem:[%s5685_s26] ss:$0 sm:$0xff] }
 0xdf8   :  { %3979 = vmatprep.subr.bf16.mxu0 %v4921_v35 }
 0xdfb   :  { %3981 = vmatpush3.bf16.msra.mxu0 %v3980_v30 }
 0xdfe   :  { %3827 = vmatmul.mubr.msk.f32.vlgmr.msra.gmra.mrb[30].mxu0 %vm960_vm2, %v5546_v32 }
 0xec1   :  { %v2799_v4 = vpop.f32.mrb[26].mxu0  ;;  %v3041_v10 = vpop.f32.mrb[30].mxu1 }
 0xec2   :  { %v2800_v13 = vadd.f32 %v2799_v4, %v2726_v31  ;;  %v3784_v14 = vpop.f32.mrb[27].mxu0  ;;  %v3817_v15 = vpop.f32.mrb[31].mxu1  ;;  %v3042_v60 = vadd.f32 %v3366_v56, %v3041_v10 }
 0xec4   :  { %v2809_v44 = vadd.f32 %v3360_v0, %v2800_v13 }
 0xec6   :  { %v3361_v16 = vmul.f32 -1.442695, %v2809_v44 }
 0xec8   :  { %4090 = vpow2.f32 %v3361_v16 }
 0xec9   :  { %v2952_v46 = vpop.f32.mrb[28].mxu0 }
 0xeca   :  { %v2953_v17 = vadd.f32 %v2952_v46, %v2882_v34  ;;  %v3806_v47 = vpop.f32.mrb[29].mxu0 }
 0xecc   :  { %v2962_v48 = vadd.f32 %v3364_v45, %v2953_v17 }
 0xece   :  { %v3365_v18 = vmul.f32 -1.442695, %v2962_v48 }
 0xed0   :  { %4092 = vpow2.f32 %v3365_v18 }
 0xed1   :  { %v3117_v35 = vpop.f32.mrb[30].mxu0 }
 0xed2   :  { %v4091_v49 = vpop.eup %4090  ;;  %v3828_v50 = vpop.f32.mrb[31].mxu0  ;;  %v3118_v55 = vadd.f32 %v3368_v52, %v3117_v35 }
 0xed3   :  { %v2813_v51 = vadd.f32 1.0, %v4091_v49 }
 0xed5   :  { %4094 = vrcp.f32 %v2813_v51 }
 0xeda   :  { %v4093_v53 = vpop.eup %4092 }
 0xedb   :  { %v2966_v54 = vadd.f32 1.0, %v4093_v53 }
 0xedd   :  { %4096 = vrcp.f32 %v2966_v54 }
 0xedf   :  { %v4095_v58 = vpop.eup %4094 }
 0xee0   :  { %v3121_v62 = vmul.f32 %v4095_v58, %v3118_v55 }
 0xee2   :  { %v3122_v63 = vadd.f32 %v3121_v62, %v3042_v60 }
 0xee4   :  { %4098 = vtanh.f32 %v3122_v63 }
 0xee7   :  { %v4097_v59 = vpop.eup %4096 }
 0xee8   :  { %v3124_v1 = vsub.f32 1.0, %v4097_v59  ;;  %v3126_v5 = vmul.f32 %v4097_v59, %v5546_v32 }
 0xeee   :  { %v4099_v3 = vpop.eup %4098 }
 0xeef   :  { %v3125_v2 = vmul.f32 %v4099_v3, %v3124_v1 }
 0xef1   :  { %v3127_v6 = vadd.f32 %v3126_v5, %v3125_v2 }
 0xef3   :  { %3838 = vmatmul.mubr.msk.f32.vlgmr.msra.gmra.mrb[32].mxu1 %vm960_vm2, %v3127_v6  ;;  %3130 = vst.msk [vmem:[#allocation50 + $0x8] sm:$0xff] %vm960_vm2, %v3127_v6 }
 0xef4   :  { %4771 = shalt.err (!%p4768_p6)
}
 0xef5   :  { %s4772_s24 = scalar_lea.hbm %s5167_s12, 256 }
 0xef6   :  { %p4773_p7 = scmp.ne.s32.totalorder %s5167_s12, %s4772_s24  ;;  %p4776_p8 = scmp.lt.u32.totalorder %s4772_s24, %s5167_s12 }
 0xef8   :  { %p4778_p9 = pnand %p4776_p8, %p4773_p7 }
 0xefa   :  { %4781 = shalt.err (!%p4778_p9)
}
 0xefb   :  { %3230 = dma.vmem_to_hbm [thread:$0]  %s3225_s7, 256, %s5167_s12, [#allocation51], %s4888_s28, %s4888_s28, %s4889_s1  }
 0xefc   :  { %s4923_s14 = smov [#allocation49]  }
 0xefd   :  { %s3215_s17 = sshll.u32 %s4923_s14, 4  ;;  %s3216_s17 = int_to_ptr.vmem [resolvable:$true] %s3215_s17 }
 0xefe   :  { %s4782_s13 = scalar_lea.vmem %s3216_s17, 128  ;;  %p4787_p11 = scmp.lt.s32.totalorder %s3216_s17, %s3216_s17 }
 0xeff   :  { %p4783_p10 = scmp.ne.s32.totalorder %s3216_s17, %s4782_s13  ;;  %p4788_p12 = scmp.lt.s32.totalorder %s4782_s13, %s4782_s13 }
 0xf01   :  { %p4789_p13 = por %p4788_p12, %p4787_p11 }
 0xf03   :  { %p4790_p0 = pnand %p4789_p13, %p4783_p10 }
 0xfc6   :  { %v3204_v32 = vpop.f32.mrb[32].mxu1 }
 0xfc7   :  { %3208 = vst [vmem:[#allocation49] sm:$0xff] %v3204_v32  ;;  %v3839_v7 = vpop.f32.mrb[33].mxu1 }
 0xfc8   :  { %4793 = shalt.err (!%p4790_p0)
}
 0xfc9   :  { %s4794_s11 = scalar_lea.hbm %s5162_s5, 128 }
 0xfca   :  { %p4795_p1 = scmp.ne.s32.totalorder %s5162_s5, %s4794_s11  ;;  %p4798_p2 = scmp.lt.u32.totalorder %s4794_s11, %s5162_s5 }
 0xfcc   :  { %p4800_p3 = pnand %p4798_p2, %p4795_p1 }
 0xfce   :  { %4803 = shalt.err (!%p4800_p3)
}
 0xfcf   :  { %3218 = dma.vmem_to_hbm [thread:$0]  %s3216_s17, 128, %s5162_s5, [#allocation4]  }
 0xfd0   :  { %4836 = dma.done.wait [#allocation4], 128  }
 0xfd1   :  { %4837 = vsyncadd [#allocation4], 4294967168 }
 0xfd2   :  { %4838 = dma.done.wait [#allocation51], 256  }
 0xfd3   :  { %4839 = vsyncadd [#allocation51], 4294967040 }
 0xfd4   :  { %3237 = vsyncpa [#allocation3], 1 }
 0xfd5   :  { %3238 = vsyncpa [#allocation6], 1 }
 0xfd6   :  { %3239 = vsyncpa [#allocation9], 1 }
 0xfd7   :  { %3240 = vsyncpa [#allocation12], 1 }
 0xfd8   :  { %3241 = vsyncpa [#allocation15], 1 }
 0xfd9   :  { %3242 = vsyncpa [#allocation18], 1 }
 0xfda   :  { %3243 = vsyncpa [#allocation21], 1 }
 0xfdb   :  { %3244 = vsyncpa [#allocation24], 1 }
 0xfdc   :  { %3245 = vsyncpa [#allocation27], 1 }
 0xfdd   :  { %3246 = vsyncpa [#allocation30], 1 }
 0xfde   :  { %3247 = vsyncpa [#allocation33], 1 }
 0xfdf   :  { %3248 = vsyncpa [#allocation36], 1 }
 0xfe0   :  { %3249 = vsyncpa [#allocation39], 1 }
 0xfe1   :  { %3250 = vsyncpa [#allocation42], 1 }
 0xfe2   :  { %3251 = vsyncpa [#allocation45], 1 }
 0xfe3   :  { %3252 = vsyncpa [#allocation48], 1 }
 0xfe4   :  { %3253 = vsyncpa [#allocation4], 1 }
 0xfe5   :  { %3254 = vsyncpa [#allocation51], 1 }

</bundles_post_ra>
